<compile_context>
chip_gen: v7x
topology: tpu7x:2x2x1
jax: 0.10.0
libtpu: 0.0.40
codegen_flags: <defaults>
</compile_context>

<pallas_src>
import jax
import jax.numpy as jnp
from jax import lax
from jax.experimental import pallas as pl
from jax.experimental.pallas import tpu as pltpu

# ----------------------------- configuration -------------------------------
CLASS_NUM = 6        # number of attribute heads (ClassBlock count)
NUM_FTRS = 1000      # Backbone.num_ftrs (timm classifier output dim)
C_MID = 32           # hidden channels of the stub feature extractor

_LANE = 128
CMID_PAD = _LANE                                        # 32   -> 128
NFTRS_PAD = ((NUM_FTRS + _LANE - 1) // _LANE) * _LANE   # 1000 -> 1024
CLASS_PAD = _LANE                                       # 6    -> 128 (lane-dense out)
POOL_N = 8           # columns of the all-ones pooling matmul (identical cols)


def _pick_batch_tile(b):
    """bt multiple of 8 when possible (keeps the out block sublane-aligned and,
    for B > 8, gives the parallel batch axis >= 2 steps for v7x's 2 TCs);
    otherwise a full-batch block (== full array dim, still a legal BlockSpec)."""
    if b % 8 == 0:
        return 8
    return b


def _pick_hw_tile(hw, cap=2048):
    """Largest multiple-of-128 divisor of hw that is <= cap and leaves >= 2 HW
    tiles (so the x DMA pipelines); fallback: the full spatial extent."""
    best = None
    t = _LANE
    limit = min(hw // 2, cap)
    while t <= limit:
        if hw % t == 0:
            best = t
        t += _LANE
    return best if best is not None else hw


def _pad2(a, rows, cols):
    r, c = a.shape
    return jnp.pad(a, ((0, rows - r), (0, cols - c)))


# ------------------------------ fused kernel --------------------------------
def _backbone_kernel(x_ref, w1t_ref, b1_ref, wf_ref, bf_ref, wc_ref, bc_ref,
                     out_ref, acc_ref):
    """Fused stub-trunk + ClassBlock heads.

    Grid: (batch tiles [parallel], HW tiles [arbitrary/reduction]).
      x:    (bt, C, thw) f32   channels-minor-free view of NCHW (lane axis = thw)
      w1t:  (128, C) bf16      1x1 conv (transposed)   b1: (128, 1) bf16
      wf:   (128, 1024) bf16   feature projection      bf: (1, 1024) f32
      wc:   (1024, 128) bf16   stacked heads           bc: (1, 128) f32
      out:  (bt, 128) f32      sigmoid probs (padded; wrapper slices :CLASS_NUM)
      acc:  (bt, 128, POOL_N) f32  running pooled sums (VMEM scratch)
    """
    hw_id = pl.program_id(1)

    @pl.when(hw_id == 0)
    def _init():
        acc_ref[...] = jnp.zeros_like(acc_ref)

    bt, _, thw = x_ref.shape
    w1t = w1t_ref[...]                       # (CMID_PAD, C) bf16
    b1 = b1_ref[...]                         # (CMID_PAD, 1) bf16
    ones_pool = jnp.ones((thw, POOL_N), jnp.bfloat16)   # hoisted, loop-invariant

    def body(bi, carry):
        xc = x_ref[bi].astype(jnp.bfloat16)                          # (C, thw)
        # 1x1 conv on the MXU (K = C), f32 accumulate.
        h = jnp.dot(w1t, xc, preferred_element_type=jnp.float32)     # (128, thw)
        # bias + ReLU in bf16 (packed elementwise; bf16 needed for pooling anyway)
        hb = jnp.maximum(h.astype(jnp.bfloat16) + b1, 0)             # (128, thw)
        # global-average-pool partial sum on the MXU (ones matmul, K = thw)
        part = jnp.dot(hb, ones_pool, preferred_element_type=jnp.float32)
        acc_ref[bi] = acc_ref[bi] + part                             # (128, POOL_N)
        return carry

    lax.fori_loop(0, bt, body, 0)

    @pl.when(hw_id == pl.num_programs(1) - 1)
    def _finalize():
        # All POOL_N pooled columns are identical; fold the extra factor of
        # POOL_N into the mean normalization. thw divides HW exactly.
        scale = 1.0 / (pl.num_programs(1) * thw * POOL_N)
        pooled = (jnp.sum(acc_ref[...], axis=-1) * scale).astype(jnp.bfloat16)
        feat = jnp.dot(pooled, wf_ref[...],
                       preferred_element_type=jnp.float32) + bf_ref[...]
        logits = jnp.dot(feat.astype(jnp.bfloat16), wc_ref[...],
                         preferred_element_type=jnp.float32) + bc_ref[...]
        # exact sigmoid (runs once per batch tile; keeps outputs in [0, 1])
        out_ref[...] = 1.0 / (1.0 + jnp.exp(-logits))


# ------------------------------ wrapper --------------------------------------
def init_params(key, cin):
    """Deterministic synthetic parameters (shapes implied by the module)."""
    k1, k2, k3, k4 = jax.random.split(key, 4)
    w1 = jax.random.normal(k1, (cin, C_MID), jnp.float32) / jnp.sqrt(float(cin))
    b1 = jnp.zeros((1, C_MID), jnp.float32)
    wf = jax.random.normal(k2, (C_MID, NUM_FTRS), jnp.float32) / jnp.sqrt(float(C_MID))
    bf = jnp.zeros((1, NUM_FTRS), jnp.float32)
    # CLASS_NUM heads, each a Linear(NUM_FTRS, 1); stacked along the output dim
    wc = jax.random.normal(k3, (NUM_FTRS, CLASS_NUM), jnp.float32) / jnp.sqrt(float(NUM_FTRS))
    bc = 0.01 * jax.random.normal(k4, (1, CLASS_NUM), jnp.float32)
    return dict(w1=w1, b1=b1, wf=wf, bf=bf, wc=wc, bc=bc)


@jax.jit
def backbone_forward(x_nchw, params):
    B, C, H, W = x_nchw.shape
    HW = H * W

    # FREE view of the NCHW input: (B, C, HW); no transpose, no cast pass.
    x = x_nchw.reshape(B, C, HW)

    # zero-pad weights to lane-dense shapes (math is unchanged); bf16 matmul
    # operands, f32 biases for the head stage.
    w1t = _pad2(params["w1"].T, CMID_PAD, C).astype(jnp.bfloat16)     # (128, C)
    b1c = _pad2(params["b1"].T, CMID_PAD, 1).astype(jnp.bfloat16)     # (128, 1)
    wf = _pad2(params["wf"], CMID_PAD, NFTRS_PAD).astype(jnp.bfloat16)
    bf = _pad2(params["bf"], 1, NFTRS_PAD)
    wc = _pad2(params["wc"], NFTRS_PAD, CLASS_PAD).astype(jnp.bfloat16)
    bc = _pad2(params["bc"], 1, CLASS_PAD)

    bt = _pick_batch_tile(B)
    thw = _pick_hw_tile(HW)
    grid = (B // bt, HW // thw)

    out_padded = pl.pallas_call(
        _backbone_kernel,
        grid=grid,
        in_specs=[
            pl.BlockSpec((bt, C, thw), lambda b, t: (b, 0, t)),        # x (lane = thw)
            pl.BlockSpec((CMID_PAD, C), lambda b, t: (0, 0)),          # w1t
            pl.BlockSpec((CMID_PAD, 1), lambda b, t: (0, 0)),          # b1
            pl.BlockSpec((CMID_PAD, NFTRS_PAD), lambda b, t: (0, 0)),  # wf
            pl.BlockSpec((1, NFTRS_PAD), lambda b, t: (0, 0)),         # bf
            pl.BlockSpec((NFTRS_PAD, CLASS_PAD), lambda b, t: (0, 0)), # wc
            pl.BlockSpec((1, CLASS_PAD), lambda b, t: (0, 0)),         # bc
        ],
        out_specs=pl.BlockSpec((bt, CLASS_PAD), lambda b, t: (b, 0)),
        out_shape=jax.ShapeDtypeStruct((B, CLASS_PAD), jnp.float32),
        scratch_shapes=[pltpu.VMEM((bt, CMID_PAD, POOL_N), jnp.float32)],
        compiler_params=pltpu.CompilerParams(
            dimension_semantics=("parallel", "arbitrary"),
            # total working set is a few MiB now (x tile <= ~1 MiB double-buffered,
            # weights ~1 MiB, temps ~2 MiB) -> comfortably under v7x's 64 MiB VMEM
            vmem_limit_bytes=32 * 1024 * 1024,
        ),
    )(x, w1t, b1c, wf, bf, wc, bc)

    # lane-dense kernel output -> exact module output shape
    return out_padded[:, :CLASS_NUM]


# -------------------------------- main ---------------------------------------
if __name__ == "__main__":
    key = jax.random.PRNGKey(0)
    kx, kp = jax.random.split(key)

    B, C, H, W = 2, 4, 16, 16
    x = jax.random.normal(kx, (B, C, H, W), jnp.float32)
    params = init_params(kp, C)

    out = jax.block_until_ready(backbone_forward(x, params))

    assert out.shape == (B, CLASS_NUM), out.shape
    assert out.dtype == jnp.float32, out.dtype
    assert bool(jnp.all((out >= 0.0) & (out <= 1.0)))   # sigmoid outputs

    # pure-JAX f32 reference of the same stub trunk + heads (loose tol: bf16 MXU)
    xe = jnp.transpose(x, (0, 2, 3, 1)).reshape(B, H * W, C)
    h = jnp.maximum(jnp.einsum("bpc,cm->bpm", xe, params["w1"]) + params["b1"], 0.0)
    pooled = jnp.mean(h, axis=1)
    feat = pooled @ params["wf"] + params["bf"]
    ref = jax.nn.sigmoid(feat @ params["wc"] + params["bc"])
    assert float(jnp.max(jnp.abs(out - ref))) < 3e-2

    print("KERNEL_OK")
</pallas_src>

<mosaic_0001>
module attributes {stable_mosaic.version = 11 : i64} {
  func.func @_backbone_kernel(%arg0: i32, %arg1: i32, %arg2: memref<2x4x128xf32, #tpu.memory_space<vmem>>, %arg3: memref<128x4xbf16, #tpu.memory_space<vmem>>, %arg4: memref<128x1xbf16, #tpu.memory_space<vmem>>, %arg5: memref<128x1024xbf16, #tpu.memory_space<vmem>>, %arg6: memref<1x1024xf32, #tpu.memory_space<vmem>>, %arg7: memref<1024x128xbf16, #tpu.memory_space<vmem>>, %arg8: memref<1x128xf32, #tpu.memory_space<vmem>>, %arg9: memref<2x128xf32, #tpu.memory_space<vmem>>, %arg10: memref<2x128x8xf32, #tpu.memory_space<vmem>>) attributes {dimension_semantics = [#tpu.dimension_semantics<parallel>, #tpu.dimension_semantics<arbitrary>], iteration_bounds = array<i64: 1, 2>, scalar_prefetch = 0 : i64, scratch_operands = 1 : i64, tpu.core_type = #tpu.core_type<tc>, window_params = [{transform_indices = @transform_0, window_bounds = array<i64: 2, 4, 128>}, {pipeline_mode = #tpu.pipeline_mode<synchronous>, transform_indices = @transform_1, window_bounds = array<i64: 128, 4>}, {pipeline_mode = #tpu.pipeline_mode<synchronous>, transform_indices = @transform_2, window_bounds = array<i64: 128, 1>}, {pipeline_mode = #tpu.pipeline_mode<synchronous>, transform_indices = @transform_3, window_bounds = array<i64: 128, 1024>}, {pipeline_mode = #tpu.pipeline_mode<synchronous>, transform_indices = @transform_4, window_bounds = array<i64: 1, 1024>}, {pipeline_mode = #tpu.pipeline_mode<synchronous>, transform_indices = @transform_5, window_bounds = array<i64: 1024, 128>}, {pipeline_mode = #tpu.pipeline_mode<synchronous>, transform_indices = @transform_6, window_bounds = array<i64: 1, 128>}, {transform_indices = @transform_7, window_bounds = array<i64: 2, 128>}]} {
    %c0_i32 = arith.constant 0 : i32
    %0 = arith.cmpi eq, %arg1, %c0_i32 : i32
    %1 = arith.extui %0 : i1 to i32
    %c0_i32_0 = arith.constant 0 : i32
    %2 = arith.cmpi ne, %1, %c0_i32_0 : i32
    scf.if %2 {
      %cst_8 = arith.constant 0.000000e+00 : f32
      %10 = vector.broadcast %cst_8 : f32 to vector<2x128x8xf32>
      %c0_9 = arith.constant 0 : index
      %c0_10 = arith.constant 0 : index
      %c0_11 = arith.constant 0 : index
      %11 = vector.load %arg10[%c0_9, %c0_10, %c0_11] : memref<2x128x8xf32, #tpu.memory_space<vmem>>, vector<2x128x8xf32>
      tpu.vector_store %arg10[%c0_9, %c0_10, %c0_11], %10 {strides = array<i32>} : memref<2x128x8xf32, #tpu.memory_space<vmem>>, vector<2x128x8xf32>,
    } else {
    }
    %c0 = arith.constant 0 : index
    %c0_1 = arith.constant 0 : index
    %3 = vector.load %arg3[%c0, %c0_1] : memref<128x4xbf16, #tpu.memory_space<vmem>>, vector<128x4xbf16>
    %c0_2 = arith.constant 0 : index
    %c0_3 = arith.constant 0 : index
    %4 = vector.load %arg4[%c0_2, %c0_3] : memref<128x1xbf16, #tpu.memory_space<vmem>>, vector<128x1xbf16>
    %cst = arith.constant 1.000000e+00 : bf16
    %5 = vector.broadcast %cst : bf16 to vector<128x8xbf16>
    %c0_i32_4 = arith.constant 0 : i32
    %c2_i32 = arith.constant 2 : i32
    %6 = arith.addi %c0_i32_4, %c2_i32 : i32
    %c1_i32 = arith.constant 1 : i32
    scf.for %arg11 = %c0_i32_4 to %6 step %c1_i32  : i32 {
      %10 = arith.index_cast %arg11 : i32 to index
      %c0_8 = arith.constant 0 : index
      %c0_9 = arith.constant 0 : index
      %11 = vector.load %arg2[%10, %c0_8, %c0_9] : memref<2x4x128xf32, #tpu.memory_space<vmem>>, vector<1x4x128xf32>
      %12 = vector.shape_cast %11 : vector<1x4x128xf32> to vector<4x128xf32>
      %13 = arith.truncf %12 : vector<4x128xf32> to vector<4x128xbf16>
      %cst_10 = arith.constant dense<0.000000e+00> : vector<128x128xf32>
      %14 = tpu.matmul %3, %13, %cst_10 {dimension_numbers = #tpu.dot_dimension_numbers<[1], [0], [0], [1], [0, 0, 1, 1], [], []>} : vector<128x4xbf16>, vector<4x128xbf16>, vector<128x128xf32> -> vector<128x128xf32>
      %15 = arith.truncf %14 : vector<128x128xf32> to vector<128x128xbf16>
      %16 = vector.broadcast %4 : vector<128x1xbf16> to vector<128x128xbf16>
      %17 = arith.addf %15, %16 : vector<128x128xbf16>
      %cst_11 = arith.constant 0.000000e+00 : bf16
      %18 = vector.broadcast %cst_11 : bf16 to vector<128x128xbf16>
      %19 = arith.maximumf %17, %18 : vector<128x128xbf16>
      %cst_12 = arith.constant dense<0.000000e+00> : vector<128x8xf32>
      %20 = tpu.matmul %19, %5, %cst_12 {dimension_numbers = #tpu.dot_dimension_numbers<[1], [0], [0], [1], [0, 0, 1, 1], [], []>} : vector<128x128xbf16>, vector<128x8xbf16>, vector<128x8xf32> -> vector<128x8xf32>
      %21 = arith.index_cast %arg11 : i32 to index
      %c0_13 = arith.constant 0 : index
      %c0_14 = arith.constant 0 : index
      %22 = vector.load %arg10[%21, %c0_13, %c0_14] : memref<2x128x8xf32, #tpu.memory_space<vmem>>, vector<1x128x8xf32>
      %23 = vector.shape_cast %22 : vector<1x128x8xf32> to vector<128x8xf32>
      %24 = arith.addf %23, %20 : vector<128x8xf32>
      %25 = arith.index_cast %arg11 : i32 to index
      %c0_15 = arith.constant 0 : index
      %c0_16 = arith.constant 0 : index
      %26 = vector.load %arg10[%25, %c0_15, %c0_16] : memref<2x128x8xf32, #tpu.memory_space<vmem>>, vector<1x128x8xf32>
      %27 = vector.shape_cast %26 : vector<1x128x8xf32> to vector<128x8xf32>
      %28 = vector.shape_cast %24 : vector<128x8xf32> to vector<1x128x8xf32>
      tpu.vector_store %arg10[%25, %c0_15, %c0_16], %28 {strides = array<i32>} : memref<2x128x8xf32, #tpu.memory_space<vmem>>, vector<1x128x8xf32>,
    }
    %c2_i32_5 = arith.constant 2 : i32
    %c1_i32_6 = arith.constant 1 : i32
    %7 = arith.cmpi eq, %arg1, %c1_i32_6 : i32
    %8 = arith.extui %7 : i1 to i32
    %c0_i32_7 = arith.constant 0 : i32
    %9 = arith.cmpi ne, %8, %c0_i32_7 : i32
    scf.if %9 {
      %c0_8 = arith.constant 0 : index
      %c0_9 = arith.constant 0 : index
      %c0_10 = arith.constant 0 : index
      %10 = vector.load %arg10[%c0_8, %c0_9, %c0_10] : memref<2x128x8xf32, #tpu.memory_space<vmem>>, vector<2x128x8xf32>
      %cst_11 = arith.constant dense<0.000000e+00> : vector<2x128xf32>
      %11 = vector.multi_reduction <add>, %10, %cst_11 [2] : vector<2x128x8xf32> to vector<2x128xf32>
      %cst_12 = arith.constant 4.8828125E-4 : f32
      %12 = vector.broadcast %cst_12 : f32 to vector<2x128xf32>
      %13 = arith.mulf %11, %12 : vector<2x128xf32>
      %14 = arith.truncf %13 : vector<2x128xf32> to vector<2x128xbf16>
      %c0_13 = arith.constant 0 : index
      %c0_14 = arith.constant 0 : index
      %15 = vector.load %arg5[%c0_13, %c0_14] : memref<128x1024xbf16, #tpu.memory_space<vmem>>, vector<128x1024xbf16>
      %cst_15 = arith.constant dense<0.000000e+00> : vector<2x1024xf32>
      %16 = tpu.matmul %14, %15, %cst_15 {dimension_numbers = #tpu.dot_dimension_numbers<[1], [0], [0], [1], [0, 0, 1, 1], [], []>} : vector<2x128xbf16>, vector<128x1024xbf16>, vector<2x1024xf32> -> vector<2x1024xf32>
      %c0_16 = arith.constant 0 : index
      %c0_17 = arith.constant 0 : index
      %17 = vector.load %arg6[%c0_16, %c0_17] : memref<1x1024xf32, #tpu.memory_space<vmem>>, vector<1x1024xf32>
      %18 = vector.broadcast %17 : vector<1x1024xf32> to vector<2x1024xf32>
      %19 = arith.addf %16, %18 : vector<2x1024xf32>
      %20 = arith.truncf %19 : vector<2x1024xf32> to vector<2x1024xbf16>
      %c0_18 = arith.constant 0 : index
      %c0_19 = arith.constant 0 : index
      %21 = vector.load %arg7[%c0_18, %c0_19] : memref<1024x128xbf16, #tpu.memory_space<vmem>>, vector<1024x128xbf16>
      %cst_20 = arith.constant dense<0.000000e+00> : vector<2x128xf32>
      %22 = tpu.matmul %20, %21, %cst_20 {dimension_numbers = #tpu.dot_dimension_numbers<[1], [0], [0], [1], [0, 0, 1, 1], [], []>} : vector<2x1024xbf16>, vector<1024x128xbf16>, vector<2x128xf32> -> vector<2x128xf32>
      %c0_21 = arith.constant 0 : index
      %c0_22 = arith.constant 0 : index
      %23 = vector.load %arg8[%c0_21, %c0_22] : memref<1x128xf32, #tpu.memory_space<vmem>>, vector<1x128xf32>
      %24 = vector.broadcast %23 : vector<1x128xf32> to vector<2x128xf32>
      %25 = arith.addf %22, %24 : vector<2x128xf32>
      %cst_23 = arith.constant 0.000000e+00 : f32
      %26 = vector.broadcast %cst_23 : f32 to vector<2x128xf32>
      %27 = arith.subf %26, %25 : vector<2x128xf32>
      %28 = math.exp %27 : vector<2x128xf32>
      %cst_24 = arith.constant 1.000000e+00 : f32
      %29 = vector.broadcast %cst_24 : f32 to vector<2x128xf32>
      %30 = arith.addf %29, %28 : vector<2x128xf32>
      %cst_25 = arith.constant 1.000000e+00 : f32
      %31 = vector.broadcast %cst_25 : f32 to vector<2x128xf32>
      %32 = arith.divf %31, %30 : vector<2x128xf32>
      %c0_26 = arith.constant 0 : index
      %c0_27 = arith.constant 0 : index
      %33 = vector.load %arg9[%c0_26, %c0_27] : memref<2x128xf32, #tpu.memory_space<vmem>>, vector<2x128xf32>
      tpu.vector_store %arg9[%c0_26, %c0_27], %32 {strides = array<i32>} : memref<2x128xf32, #tpu.memory_space<vmem>>, vector<2x128xf32>,
    } else {
    }
    return
  }
  func.func @transform_0(%arg0: i32, %arg1: i32) -> (i32, i32, i32) {
    %c0_i32 = arith.constant 0 : i32
    %c0_i32_0 = arith.constant 0 : i32
    return %arg0, %c0_i32, %arg1 : i32, i32, i32
  }
  func.func @transform_1(%arg0: i32, %arg1: i32) -> (i32, i32) {
    %c0_i32 = arith.constant 0 : i32
    %c0_i32_0 = arith.constant 0 : i32
    %c0_i32_1 = arith.constant 0 : i32
    return %c0_i32, %c0_i32_0 : i32, i32
  }
  func.func @transform_2(%arg0: i32, %arg1: i32) -> (i32, i32) {
    %c0_i32 = arith.constant 0 : i32
    %c0_i32_0 = arith.constant 0 : i32
    %c0_i32_1 = arith.constant 0 : i32
    return %c0_i32, %c0_i32_0 : i32, i32
  }
  func.func @transform_3(%arg0: i32, %arg1: i32) -> (i32, i32) {
    %c0_i32 = arith.constant 0 : i32
    %c0_i32_0 = arith.constant 0 : i32
    %c0_i32_1 = arith.constant 0 : i32
    return %c0_i32, %c0_i32_0 : i32, i32
  }
  func.func @transform_4(%arg0: i32, %arg1: i32) -> (i32, i32) {
    %c0_i32 = arith.constant 0 : i32
    %c0_i32_0 = arith.constant 0 : i32
    %c0_i32_1 = arith.constant 0 : i32
    return %c0_i32, %c0_i32_0 : i32, i32
  }
  func.func @transform_5(%arg0: i32, %arg1: i32) -> (i32, i32) {
    %c0_i32 = arith.constant 0 : i32
    %c0_i32_0 = arith.constant 0 : i32
    %c0_i32_1 = arith.constant 0 : i32
    return %c0_i32, %c0_i32_0 : i32, i32
  }
  func.func @transform_6(%arg0: i32, %arg1: i32) -> (i32, i32) {
    %c0_i32 = arith.constant 0 : i32
    %c0_i32_0 = arith.constant 0 : i32
    %c0_i32_1 = arith.constant 0 : i32
    return %c0_i32, %c0_i32_0 : i32, i32
  }
  func.func @transform_7(%arg0: i32, %arg1: i32) -> (i32, i32) {
    %c0_i32 = arith.constant 0 : i32
    %c0_i32_0 = arith.constant 0 : i32
    return %arg0, %c0_i32 : i32, i32
  }
}

</mosaic_0001>

<bundles_post_ra>
// kernel: backbone_forward.1
= control target key start
LH: loop header
LB: loop body
LE: loop exit
PB: predicated region body
PF: predicated region fallthrough
CT: control target
= control target key end

     0   :  { %12 = vsyncpa [#allocation5], 0  ;;  %s3377_s24 = smov 0   ;;  %s3379_s25 = smov 0   ;;  %s4372_s0 = inlined_call_operand.vmem [shape: f32[2,4,256], index: 0, kind: input, shape index: {}]   ;;  %s4373_s1 = inlined_call_operand.vmem [shape: bf16[128,4], index: 1, kind: input, shape index: {}]   ;;  %s4374_s2 = inlined_call_operand.vmem [shape: bf16[128,1], index: 2, kind: input, shape index: {}]   ;;  %s4375_s3 = inlined_call_operand.vmem [shape: bf16[128,1024], index: 3, kind: input, shape index: {}]   ;;  %s4376_s4 = inlined_call_operand.vmem [shape: f32[1,1024], index: 4, kind: input, shape index: {}]   ;;  %s4377_s5 = inlined_call_operand.vmem [shape: bf16[1024,128], index: 5, kind: input, shape index: {}]   ;;  %s4378_s6 = inlined_call_operand.vmem [shape: f32[1,128], index: 6, kind: input, shape index: {}]   ;;  %s4379_s7 = inlined_call_operand.hbm [shape: f32[2,128], index: 7, kind: output, shape index: {}]  }
   0x1   :  { %s3381_s26 = smov 0   ;;  %s3383_s27 = smov 0  }
   0x2   :  { %s3385_s28 = smov 0  }
   0x3 LB: > { %s2775_s29 = sadd.s32 4294967295, %s3325_s28   ;;  %s27_s30 = sadd.s32 1, %s3321_s27  ;;  %s3325_s28 = sphi %s3385_s28, %s18_s28   ;;  %s3321_s27 = sphi %s3383_s27, %s4393_s27   ;;  %s3317_s26 = sphi %s3381_s26, %s4392_s26   ;;  %s3313_s25 = sphi %s3379_s25, %s4391_s25   ;;  %s3309_s24 = sphi %s3377_s24, %s4390_s24  }
   0x4   : > { %p28_p0 = scmp.ge.s32.totalorder %s27_s30, 2  ;;  %p46_p1 = scmp.ne.s32.totalorder %s3313_s25, %s3309_s24 }
   0x5   : > { %p47_p2 = scmp.eq.s32.totalorder %s3325_s28, 0  ;;  %s39_s9 = sadd.s32 1, %s3313_s25 }
   0x6   : > { %s4395_s30 = smov (%p28_p0, %s27_s30), 0  ;;  %p2777_p5 = scmp.ge.s32.totalorder %s3325_s28, 2 }
   0x7   : > { %p48_p3 = por %p47_p2, %p46_p1  ;;  %s35_s8 = ssub.s32 %s3321_s27, %s4395_s30 }
   0x8   : > { %p37_p4 = scmp.eq.s32.totalorder %s35_s8, 0  ;;  %242 = sbr.rel (%p2777_p5) target bundleno = 22 (0x16), region = 40 }
   0xa   : > { %s3413_s10 = scalar_select %p37_p4, %s3313_s25, %s39_s9  }
   0xf   : > { %245 = sbr.rel (!%p48_p3) target bundleno = 22 (0x16), region = 44  ;;  %s247_s11 = sand.u32 (%p48_p3), 1, %s3313_s25  }
  0x10   : > { %s2779_s12 = sshll.u32 (%p48_p3), %s3321_s27, 2  ;;  %s2778_s13 = sshll.u32 (%p48_p3), %s247_s11, 3 }
  0x11   : > { %s254_s16 = scalar_lea.vmem (%p48_p3), %s4372_s0, %s2779_s12  ;;  %s249_s17 = scalar_lea.vmem (%p48_p3), [#allocation3], %s2778_s13 }
  0x12   : > { %v270_v0 = vld [vmem:[%s254_s16] sm:$0xf] (%p48_p3)  ;;  %v272_v1 = vld [vmem:[%s254_s16 + $0x8] sm:$0xf] (%p48_p3) }
  0x13   : > { %271 = vst [vmem:[%s249_s17] sm:$0xf] (%p48_p3), %v270_v0  ;;  %273 = vst [vmem:[%s249_s17 + $0x4] sm:$0xf] (%p48_p3), %v272_v1 }
  0x16 PF: > { %p2780_p6 = scmp.ge.s32.totalorder %s3325_s28, 1  ;;  %p299_p7 = scmp.lt.s32.totalorder %s3325_s28, 3 }
  0x18   : > { %p300_p8 = pnand %p2780_p6, %p299_p7 }
  0x1a   : > { %303 = sbr.rel (%p300_p8) target bundleno = 1283 (0x503), region = 85 }
  0x21   : > { %s306_s18 = sand.u32 1, %s3309_s24   ;;  %p2782_p9 = scmp.ne.s32.totalorder %s3317_s26, 0 }
  0x22   : > { %s3424_s19 = sshll.u32 %s306_s18, 3  ;;  %vm339_vm0 = vcmask (!%p2782_p9), 64512   ;;  %v3331_v2 = vmov (!%p2782_p9), 0.0  }
  0x23   : > { %s308_s20 = scalar_lea.vmem [#allocation3], %s3424_s19  ;;  %338 = sbr.rel (%p2782_p9) target bundleno = 51 (0x33), region = 93  ;;  %340 = vst.msk [vmem:[#allocation2] sm:$0xff] (!%p2782_p9), %vm339_vm0, %v3331_v2  ;;  %341 = vst.msk [vmem:[#allocation2 + $0x8] sm:$0xff] (!%p2782_p9), %vm339_vm0, %v3331_v2 }
  0x24   : > { %342 = vst.msk [vmem:[#allocation2 + $0x10] sm:$0xff] (!%p2782_p9), %vm339_vm0, %v3331_v2  ;;  %343 = vst.msk [vmem:[#allocation2 + $0x18] sm:$0xff] (!%p2782_p9), %vm339_vm0, %v3331_v2 }
  0x25   : > { %344 = vst.msk [vmem:[#allocation2 + $0x20] sm:$0xff] (!%p2782_p9), %vm339_vm0, %v3331_v2  ;;  %345 = vst.msk [vmem:[#allocation2 + $0x28] sm:$0xff] (!%p2782_p9), %vm339_vm0, %v3331_v2 }
  0x26   : > { %346 = vst.msk [vmem:[#allocation2 + $0x30] sm:$0xff] (!%p2782_p9), %vm339_vm0, %v3331_v2  ;;  %347 = vst.msk [vmem:[#allocation2 + $0x38] sm:$0xff] (!%p2782_p9), %vm339_vm0, %v3331_v2 }
  0x27   : > { %348 = vst.msk [vmem:[#allocation2 + $0x40] sm:$0xff] (!%p2782_p9), %vm339_vm0, %v3331_v2  ;;  %349 = vst.msk [vmem:[#allocation2 + $0x48] sm:$0xff] (!%p2782_p9), %vm339_vm0, %v3331_v2 }
  0x28   : > { %350 = vst.msk [vmem:[#allocation2 + $0x50] sm:$0xff] (!%p2782_p9), %vm339_vm0, %v3331_v2  ;;  %351 = vst.msk [vmem:[#allocation2 + $0x58] sm:$0xff] (!%p2782_p9), %vm339_vm0, %v3331_v2 }
  0x29   : > { %352 = vst.msk [vmem:[#allocation2 + $0x60] sm:$0xff] (!%p2782_p9), %vm339_vm0, %v3331_v2  ;;  %353 = vst.msk [vmem:[#allocation2 + $0x68] sm:$0xff] (!%p2782_p9), %vm339_vm0, %v3331_v2 }
  0x2a   : > { %354 = vst.msk [vmem:[#allocation2 + $0x70] sm:$0xff] %vm339_vm0, %v3331_v2  ;;  %355 = vst.msk [vmem:[#allocation2 + $0x78] sm:$0xff] %vm339_vm0, %v3331_v2 }
  0x2b   : > { %356 = vst.msk [vmem:[#allocation2 + $0x80] sm:$0xff] %vm339_vm0, %v3331_v2  ;;  %357 = vst.msk [vmem:[#allocation2 + $0x88] sm:$0xff] %vm339_vm0, %v3331_v2 }
  0x2c   : > { %358 = vst.msk [vmem:[#allocation2 + $0x90] sm:$0xff] %vm339_vm0, %v3331_v2  ;;  %359 = vst.msk [vmem:[#allocation2 + $0x98] sm:$0xff] %vm339_vm0, %v3331_v2 }
  0x2d   : > { %360 = vst.msk [vmem:[#allocation2 + $0xa0] sm:$0xff] %vm339_vm0, %v3331_v2  ;;  %361 = vst.msk [vmem:[#allocation2 + $0xa8] sm:$0xff] %vm339_vm0, %v3331_v2 }
  0x2e   : > { %362 = vst.msk [vmem:[#allocation2 + $0xb0] sm:$0xff] %vm339_vm0, %v3331_v2  ;;  %363 = vst.msk [vmem:[#allocation2 + $0xb8] sm:$0xff] %vm339_vm0, %v3331_v2 }
  0x2f   : > { %364 = vst.msk [vmem:[#allocation2 + $0xc0] sm:$0xff] %vm339_vm0, %v3331_v2  ;;  %365 = vst.msk [vmem:[#allocation2 + $0xc8] sm:$0xff] %vm339_vm0, %v3331_v2 }
  0x30   : > { %366 = vst.msk [vmem:[#allocation2 + $0xd0] sm:$0xff] %vm339_vm0, %v3331_v2  ;;  %367 = vst.msk [vmem:[#allocation2 + $0xd8] sm:$0xff] %vm339_vm0, %v3331_v2 }
  0x31   : > { %368 = vst.msk [vmem:[#allocation2 + $0xe0] sm:$0xff] %vm339_vm0, %v3331_v2  ;;  %369 = vst.msk [vmem:[#allocation2 + $0xe8] sm:$0xff] %vm339_vm0, %v3331_v2 }
  0x32   : > { %370 = vst.msk [vmem:[#allocation2 + $0xf0] sm:$0xff] %vm339_vm0, %v3331_v2  ;;  %371 = vst.msk [vmem:[#allocation2 + $0xf8] sm:$0xff] %vm339_vm0, %v3331_v2 }
  0x33 PF: > { %v3463_v3 = vld [vmem:[%s4373_s1] sm:$0xf]  ;;  %v3468_v4 = vld [vmem:[%s4373_s1 + $0x4] sm:$0xf]  ;;  %v3473_v5 = vld [vmem:[%s4373_s1 + $0x8] sm:$0xf] }
  0x34   : > { %4383 = vst [vmem:[#allocation7_spill] sm:$0xff] %v3463_v3  ;;  %4384 = vst [vmem:[#allocation8_spill] sm:$0xff] %v3468_v4  ;;  %v3478_v6 = vld [vmem:[%s4373_s1 + $0xc] sm:$0xf]  ;;  %v3483_v7 = vld [vmem:[%s4373_s1 + $0x10] sm:$0xf] }
  0x35   : > { %v3488_v8 = vld [vmem:[%s4373_s1 + $0x14] sm:$0xf]  ;;  %v3493_v9 = vld [vmem:[%s4373_s1 + $0x18] sm:$0xf]  ;;  %v3498_v10 = vld [vmem:[%s4373_s1 + $0x1c] sm:$0xf] }
  0x36   : > { %v3503_v11 = vld [vmem:[%s4373_s1 + $0x20] sm:$0xf]  ;;  %v3508_v12 = vld [vmem:[%s4373_s1 + $0x24] sm:$0xf]  ;;  %v3513_v13 = vld [vmem:[%s4373_s1 + $0x28] sm:$0xf] }
  0x37   : > { %v3518_v14 = vld [vmem:[%s4373_s1 + $0x2c] sm:$0xf]  ;;  %v3523_v15 = vld [vmem:[%s4373_s1 + $0x30] sm:$0xf]  ;;  %v3528_v16 = vld [vmem:[%s4373_s1 + $0x34] sm:$0xf] }
  0x38   : > { %v3533_v17 = vld [vmem:[%s4373_s1 + $0x38] sm:$0xf]  ;;  %v3538_v18 = vld [vmem:[%s4373_s1 + $0x3c] sm:$0xf]  ;;  %v3543_v19 = vld [vmem:[%s4374_s2] sm:$0xf] }
  0x39   : > { %v3548_v20 = vld [vmem:[%s4374_s2 + $0x4] sm:$0xf]  ;;  %v3553_v21 = vld [vmem:[%s4374_s2 + $0x8] sm:$0xf]  ;;  %v3558_v22 = vld [vmem:[%s4374_s2 + $0xc] sm:$0xf] }
  0x3a   : > { %v3563_v23 = vld [vmem:[%s4374_s2 + $0x10] sm:$0xf]  ;;  %v3568_v24 = vld [vmem:[%s4374_s2 + $0x14] sm:$0xf]  ;;  %v3573_v25 = vld [vmem:[%s4374_s2 + $0x18] sm:$0xf] }
  0x3b   : > { %v3578_v26 = vld [vmem:[%s4374_s2 + $0x1c] sm:$0xf]  ;;  %v3583_v27 = vld [vmem:[%s4374_s2 + $0x20] sm:$0xf]  ;;  %v3588_v28 = vld [vmem:[%s4374_s2 + $0x24] sm:$0xf] }
  0x3c   : > { %v3593_v29 = vld [vmem:[%s4374_s2 + $0x28] sm:$0xf]  ;;  %v3598_v30 = vld [vmem:[%s4374_s2 + $0x2c] sm:$0xf]  ;;  %v3603_v31 = vld [vmem:[%s4374_s2 + $0x30] sm:$0xf] }
  0x3d   : > { %v3608_v32 = vld [vmem:[%s4374_s2 + $0x34] sm:$0xf]  ;;  %v3613_v33 = vld [vmem:[%s4374_s2 + $0x38] sm:$0xf]  ;;  %v3618_v34 = vld [vmem:[%s4374_s2 + $0x3c] sm:$0xf] }
  0x3e   : > { %s3620_s13 = smov 0  }
  0x3f LB: >> { %v4385_v4 = vld [vmem:[#allocation8_spill] sm:$0xff]  ;;  %v4386_v3 = vld [vmem:[#allocation7_spill] sm:$0xff]  ;;  %vm454_vm1 = vcmask 31744   ;;  %s2783_s14 = sshll.u32 %s3329_s13, 2  ;;  %v4381_v36 = vmov 0   ;;  %vm479_vm2 = vcmask 1041408   ;;  %v2785_v40 = vcombine.low %v3473_v5, %v3478_v6  ;;  %s3329_s13 = sphi %s3620_s13, %s409_s13  }
  0x40   : >> { %v2784_v35 = vcombine.low %v4386_v3, %v4385_v4  ;;  %s411_s15 = scalar_lea.vmem %s308_s20, %s2783_s14 [#allocation3]  ;;  %3184 = vset.pattern.permute.xlu1 %v4381_v36  ;;  %3183 = vset.pattern.permute.xlu0 %v4381_v36  ;;  %v2786_v41 = vcombine.low %v3483_v7, %v3488_v8  ;;  %v2787_v42 = vcombine.low %v3493_v9, %v3498_v10  ;;  %v3333_v44 = vmov 1065369472   ;;  %s2808_s16 = sshll.u32 %s3329_s13, 7 }
  0x41   : >> { %v412_v37 = vld [vmem:[%s411_s15] sm:$0xf]  ;;  %662 = vperm.xlu1 %3184, %v3573_v25   ;;  %638 = vperm.xlu0 %3183, %v3563_v23   ;;  %v2788_v43 = vcombine.low %v3503_v11, %v3508_v12  ;;  %v2789_v45 = vcombine.low %v3513_v13, %v3518_v14  ;;  %v2790_v46 = vcombine.low %v3523_v15, %v3528_v16  ;;  %v3334_v58 = vmov 839922192   ;;  %s3710_s17 = scalar_lea.vmem [#allocation2], %s2808_s16  ;;  %s409_s13 = sadd.s32 1, %s3329_s13  }
  0x42   : >> { %3058 = vmatprep.mubr.msk.bf16.mxu0 %vm454_vm1, %v2784_v35  ;;  %v413_v38 = vpack.c.bf16 %v412_v37, %v412_v37  ;;  %3106 = vmatprep.subr.bf16.mxu1 %v3333_v44  ;;  %v2791_v47 = vcombine.low %v3533_v17, %v3538_v18  ;;  %v594_v59 = vunpack.c.l.s4 %v3334_v58  ;;  %v4380_v60 = vlaneseq  ;;  %p406_p10 = scmp.ge.s32.totalorder %s409_s13, 2  }
  0x43   : >> { %3114 = vmatpush3.bf16.msra.mxu1 %v3333_v44  ;;  %vm975_vm3 = vcmask 64512   ;;  %p2809_p11 = scmp.ne.s32.totalorder (%p406_p10), %s3317_s26, 1 }
  0x44   : >> { %3122 = vmatprep.subr.msk.bf16.mxu0 %vm479_vm2, %v413_v38  ;;  %v481_v39 = vsel %vm479_vm2, %v413_v38, 0  ;;  %3107 = vmatprep.subr.bf16.mxu1 %v3333_v44  ;;  %v595_v61 = vunpack.c.0.s8 %v594_v59  ;;  %v3673_v62 = vshrl.u32 %v4380_v60, 7 }
  0x45   : >> { %3057 = vmatpush3.bf16.msra.mxu0 %v481_v39  ;;  %674 = vperm.xlu1 %3184, %v3578_v26  }
  0x46   : >> { %650 = vperm.xlu0 %3183, %v3568_v24   ;;  %3074 = vmatprep.subr.bf16.mxu0 %v3333_v44  ;;  %v3680_v1 = vsub.s32 %v595_v61, %v3673_v62 }
  0x47   : >> { %3115 = vmatpush3.bf16.msra.mxu1 %v3333_v44 }
  0x48   : >> { %3059 = vmatmul.mubr.msk.bf16.vlgmr.msra.gmra.mrb[0].mxu0 %vm454_vm1, %v2785_v40  ;;  %3108 = vmatprep.subr.bf16.mxu1 %v3333_v44 }
  0x49   : >> { %3062 = vmatprep.mubr.msk.bf16.mxu0 %vm454_vm1, %v2786_v41  ;;  %698 = vperm.xlu1 %3184, %v3588_v28  }
  0x4a   : >> { %686 = vperm.xlu0 %3183, %v3583_v27   ;;  %3075 = vmatpush3.bf16.msra.mxu0 %v3333_v44 }
  0x4b   : >> { %3076 = vmatprep.subr.bf16.mxu0 %v3333_v44  ;;  %3116 = vmatpush3.bf16.msra.mxu1 %v3333_v44 }
  0x4c   : >> { %3109 = vmatprep.subr.bf16.mxu1 %v3333_v44 }
  0x4d   : >> { %722 = vperm.xlu1 %3184, %v3598_v30  }
  0x4e   : >> { %710 = vperm.xlu0 %3183, %v3593_v29   ;;  %3077 = vmatpush3.bf16.msra.mxu0 %v3333_v44 }
  0x4f   : >> { %3078 = vmatprep.subr.bf16.mxu0 %v3333_v44  ;;  %3117 = vmatpush3.bf16.msra.mxu1 %v3333_v44 }
  0x50   : >> { %3063 = vmatmul.mubr.msk.bf16.gmra.mrb[4].mxu0 %vm454_vm1, %v2787_v42  ;;  %3110 = vmatprep.subr.bf16.mxu1 %v3333_v44 }
  0x51   : >> { %3066 = vmatprep.mubr.msk.bf16.mxu0 %vm454_vm1, %v2788_v43  ;;  %602 = vperm.xlu1 %3184, %v3548_v20  }
  0x52   : >> { %590 = vperm.xlu0 %3183, %v3543_v19   ;;  %3079 = vmatpush3.bf16.msra.mxu0 %v3333_v44 }
  0x53   : >> { %3080 = vmatprep.subr.bf16.mxu0 %v3333_v44  ;;  %3118 = vmatpush3.bf16.msra.mxu1 %v3333_v44 }
  0x54   : >> { %3111 = vmatprep.subr.bf16.mxu1 %v3333_v44 }
  0x55   : >> { %746 = vperm.xlu1 %3184, %v3608_v32  }
  0x56   : >> { %734 = vperm.xlu0 %3183, %v3603_v31   ;;  %3081 = vmatpush3.bf16.msra.mxu0 %v3333_v44 }
  0x57   : >> { %3082 = vmatprep.subr.bf16.mxu0 %v3333_v44  ;;  %3119 = vmatpush3.bf16.msra.mxu1 %v3333_v44 }
  0x58   : >> { %3067 = vmatmul.mubr.msk.bf16.gmra.mrb[8].mxu0 %vm454_vm1, %v2789_v45  ;;  %3112 = vmatprep.subr.bf16.mxu1 %v3333_v44 }
  0x59   : >> { %3070 = vmatprep.mubr.msk.bf16.mxu0 %vm454_vm1, %v2790_v46  ;;  %626 = vperm.xlu1 %3184, %v3558_v22  }
  0x5a   : >> { %614 = vperm.xlu0 %3183, %v3553_v21   ;;  %3083 = vmatpush3.bf16.msra.mxu0 %v3333_v44 }
  0x5b   : >> { %3084 = vmatprep.subr.bf16.mxu0 %v3333_v44  ;;  %3120 = vmatpush3.bf16.msra.mxu1 %v3333_v44 }
  0x5c   : >> { %3113 = vmatprep.subr.bf16.mxu1 %v3333_v44 }
  0x5d   : >> { %770 = vperm.xlu1 %3184, %v3618_v34  }
  0x5e   : >> { %758 = vperm.xlu0 %3183, %v3613_v33   ;;  %3085 = vmatpush3.bf16.msra.mxu0 %v3333_v44 }
  0x5f   : >> { %3086 = vmatprep.subr.bf16.mxu0 %v3333_v44  ;;  %3121 = vmatpush3.bf16.msra.mxu1 %v3333_v44 }
  0x60   : >> { %3071 = vmatmul.mubr.msk.bf16.gmra.mrb[12].mxu0 %vm454_vm1, %v2791_v47 }
  0x62   : >> { %3087 = vmatpush3.bf16.msra.mxu0 %v3333_v44 }
  0x63   : >> { %3088 = vmatprep.subr.bf16.mxu0 %v3333_v44 }
  0x66   : >> { %3089 = vmatpush3.bf16.msra.mxu0 %v3333_v44 }
  0xc0   : >> { %v663_v48 = vpop.permute.xlu1 %662  ;;  %v639_v49 = vpop.permute.xlu0 %638 }
  0xc1   : >> { %v671_v60 = vrot.slane %v663_v48, %v3680_v1 }
  0xc4   : >> { %v675_v50 = vpop.permute.xlu1 %674 }
  0xc5   : >> { %v651_v51 = vpop.permute.xlu0 %650 }
  0xc8   : >> { %v3670_v52 = vpop.permute.xlu1 %698 }
  0xc9   : >> { %v687_v53 = vpop.permute.xlu0 %686 }
  0xcc   : >> { %v723_v54 = vpop.permute.xlu1 %722 }
  0xcd   : >> { %v711_v55 = vpop.permute.xlu0 %710 }
  0xd0   : >> { %v603_v56 = vpop.permute.xlu1 %602 }
  0xd1   : >> { %v591_v57 = vpop.permute.xlu0 %590  ;;  %v611_v39 = vrot.slane %v603_v56, %v3680_v1  ;;  %v659_v56 = vrot.slane %v651_v51, %v3680_v1  ;;  %v719_v51 = vrot.slane %v711_v55, %v3680_v1 }
  0xd2   : >> { %v599_v40 = vrot.slane %v591_v57, %v3680_v1  ;;  %v4387_v57 = vmov 0  }
  0xd4   : >> { %v3675_v63 = vpop.permute.xlu1 %746  ;;  %v2800_v47 = vcombine.low %v599_v40, %v611_v39 }
  0xd5   : >> { %v3677_v0 = vpop.permute.xlu0 %734 }
  0xd8   : >> { %v627_v2 = vpop.permute.xlu1 %626 }
  0xd9   : >> { %v615_v35 = vpop.permute.xlu0 %614  ;;  %v635_v37 = vrot.slane %v627_v2, %v3680_v1  ;;  %v683_v2 = vrot.slane %v675_v50, %v3680_v1 }
  0xda   : >> { %v623_v38 = vrot.slane %v615_v35, %v3680_v1  ;;  %v647_v35 = vrot.slane %v639_v49, %v3680_v1  ;;  %v731_v49 = vrot.slane %v723_v54, %v3680_v1 }
  0xdb   : >> { %v2803_v39 = vcombine.low %v671_v60, %v683_v2 }
  0xdc   : >> { %v2801_v44 = vcombine.low %v623_v38, %v635_v37 }
  0xdd   : >> { %v759_v55 = vpop.permute.xlu0 %758 }
 0x11b   : >> { %v3060_v41 = vpop.f32.mrb[0].mxu0 }
 0x11c   : >> { %v517_v42 = vpop.f32.mrb[1].mxu0 }
 0x11d   : >> { %v3061_v43 = vpop.f32.mrb[2].mxu0 }
 0x11e   : >> { %v581_v45 = vpack.c.bf16 %v3061_v43, %v3060_v41  ;;  %v520_v46 = vpop.f32.mrb[3].mxu0 }
 0x11f   : >> { %v580_v58 = vpack.c.bf16 %v520_v46, %v517_v42  ;;  %v2802_v42 = vcombine.low %v647_v35, %v659_v56  ;;  %v767_v56 = vrot.slane %v759_v55, %v3680_v1 }
 0x120   : >> { %v829_v59 = vadd.bf16 %v2801_v44, %v581_v45  ;;  %v707_v44 = vrot.slane %v3670_v52, %v3680_v1  ;;  %v695_v45 = vrot.slane %v687_v53, %v3680_v1 }
 0x121   : >> { %v828_v61 = vadd.bf16 %v2800_v47, %v580_v58  ;;  %v2805_v47 = vcombine.low %v719_v51, %v731_v49 }
 0x122   : >> { %v837_v4 = vmax.bf16 %v4387_v57, %v829_v59  ;;  %v2804_v54 = vcombine.low %v695_v45, %v707_v44 }
 0x123   : >> { %v3064_v36 = vpop.f32.mrb[4].mxu0  ;;  %v836_v3 = vmax.bf16 %v4387_v57, %v828_v61  ;;  %v771_v61 = vpop.permute.xlu1 %770 }
 0x124   : >> { %v533_v37 = vpop.f32.mrb[5].mxu0  ;;  %v779_v53 = vrot.slane %v771_v61, %v3680_v1 }
 0x125   : >> { %v3065_v38 = vpop.f32.mrb[6].mxu0  ;;  %3090 = vmatprep.mubr.bf16.mxu0 %v836_v3 }
 0x126   : >> { %v583_v40 = vpack.c.bf16 %v3065_v38, %v3064_v36  ;;  %v536_v41 = vpop.f32.mrb[7].mxu0  ;;  %3091 = vmatmul.mubr.bf16.vlgmr.msra.gmra.mrb[16].mxu0 %v837_v4  ;;  %v743_v38 = vrot.slane %v3677_v0, %v3680_v1 }
 0x127   : >> { %v582_v48 = vpack.c.bf16 %v536_v41, %v533_v37  ;;  %v755_v37 = vrot.slane %v3675_v63, %v3680_v1  ;;  %v945_v1 = vld [vmem:[%s3710_s17 + $0x10] sm:$0xff] }
 0x128   : >> { %v831_v43 = vadd.bf16 %v2803_v39, %v583_v40 }
 0x129   : >> { %v830_v50 = vadd.bf16 %v2802_v42, %v582_v48  ;;  %v2806_v51 = vcombine.low %v743_v38, %v755_v37  ;;  %v948_v38 = vld [vmem:[%s3710_s17 + $0x28] sm:$0xff] }
 0x12a   : >> { %v839_v36 = vmax.bf16 %v4387_v57, %v831_v43  ;;  %v2807_v43 = vcombine.low %v767_v56, %v779_v53  ;;  %v950_v53 = vld [vmem:[%s3710_s17 + $0x38] sm:$0xff] }
 0x12b   : >> { %v3068_v46 = vpop.f32.mrb[8].mxu0  ;;  %v838_v3 = vmax.bf16 %v4387_v57, %v830_v50 }
 0x12c   : >> { %v549_v60 = vpop.f32.mrb[9].mxu0 }
 0x12d   : >> { %v3069_v4 = vpop.f32.mrb[10].mxu0  ;;  %3094 = vmatprep.mubr.bf16.mxu1 %v838_v3  ;;  %v943_v3 = vld [vmem:[%s3710_s17] sm:$0xff] }
 0x12e   : >> { %v585_v58 = vpack.c.bf16 %v3069_v4, %v3068_v46  ;;  %v552_v59 = vpop.f32.mrb[11].mxu0  ;;  %3095 = vmatmul.mubr.bf16.vlgmr.msra.gmra.mrb[0].mxu1 %v839_v36 }
 0x12f   : >> { %v584_v2 = vpack.c.bf16 %v552_v59, %v549_v60 }
 0x130   : >> { %v833_v35 = vadd.bf16 %v2805_v47, %v585_v58  ;;  %v944_v47 = vld [vmem:[%s3710_s17 + $0x8] sm:$0xff] }
 0x131   : >> { %v832_v52 = vadd.bf16 %v2804_v54, %v584_v2  ;;  %v949_v2 = vld [vmem:[%s3710_s17 + $0x30] sm:$0xff] }
 0x132   : >> { %v841_v42 = vmax.bf16 %v4387_v57, %v833_v35  ;;  %v947_v35 = vld [vmem:[%s3710_s17 + $0x20] sm:$0xff] }
 0x133   : >> { %v3072_v39 = vpop.f32.mrb[12].mxu0  ;;  %v840_v40 = vmax.bf16 %v4387_v57, %v832_v52 }
 0x134   : >> { %v565_v41 = vpop.f32.mrb[13].mxu0 }
 0x135   : >> { %v3073_v48 = vpop.f32.mrb[14].mxu0  ;;  %3098 = vmatprep.mubr.bf16.mxu1 %v840_v40 }
 0x136   : >> { %v587_v50 = vpack.c.bf16 %v3073_v48, %v3072_v39  ;;  %v568_v49 = vpop.f32.mrb[15].mxu0  ;;  %3099 = vmatmul.mubr.bf16.gmra.mrb[4].mxu1 %v841_v42 }
 0x137   : >> { %v586_v44 = vpack.c.bf16 %v568_v49, %v565_v41 }
 0x138   : >> { %v835_v45 = vadd.bf16 %v2807_v43, %v587_v50  ;;  %v953_v43 = vld [vmem:[%s3710_s17 + $0x50] sm:$0xff]  ;;  %v951_v50 = vld [vmem:[%s3710_s17 + $0x40] sm:$0xff] }
 0x139   : >> { %v834_v63 = vadd.bf16 %v2806_v51, %v586_v44  ;;  %v954_v51 = vld [vmem:[%s3710_s17 + $0x58] sm:$0xff] }
 0x13a   : >> { %v843_v0 = vmax.bf16 %v4387_v57, %v835_v45 }
 0x13b   : >> { %v842_v46 = vmax.bf16 %v4387_v57, %v834_v63  ;;  %v946_v57 = vld [vmem:[%s3710_s17 + $0x18] sm:$0xff]  ;;  %v952_v63 = vld [vmem:[%s3710_s17 + $0x48] sm:$0xff] }
 0x13d   : >> { %3102 = vmatprep.mubr.bf16.mxu1 %v842_v46 }
 0x13e   : >> { %3103 = vmatmul.mubr.bf16.gmra.mrb[8].mxu1 %v843_v0 }
 0x1f9   : >> { %v3092_v60 = vpop.f32.mrb[16].mxu0 }
 0x1fa   : >> { %v961_v36 = vadd.f32 %v3092_v60, %v945_v1  ;;  %v878_v4 = vpop.f32.mrb[17].mxu0 }
 0x1fb   : >> { %v959_v58 = vadd.f32 %v943_v3, %v878_v4  ;;  %v3093_v59 = vpop.f32.mrb[18].mxu0 }
 0x1fc   : >> { %978 = vst.msk [vmem:[%s3710_s17 + $0x10] sm:$0xff] %vm975_vm3, %v961_v36  ;;  %v962_v54 = vadd.f32 %v3093_v59, %v946_v57  ;;  %v881_v61 = vpop.f32.mrb[19].mxu0  ;;  %v957_v57 = vld [vmem:[%s3710_s17 + $0x70] sm:$0xff]  ;;  %v955_v36 = vld [vmem:[%s3710_s17 + $0x60] sm:$0xff] }
 0x1fd   : >> { %976 = vst.msk [vmem:[%s3710_s17] sm:$0xff] %vm975_vm3, %v959_v58  ;;  %v960_v55 = vadd.f32 %v944_v47, %v881_v61  ;;  %v958_v47 = vld [vmem:[%s3710_s17 + $0x78] sm:$0xff] }
 0x1fe   : >> { %979 = vst.msk [vmem:[%s3710_s17 + $0x18] sm:$0xff] %vm975_vm3, %v962_v54  ;;  %v956_v54 = vld [vmem:[%s3710_s17 + $0x68] sm:$0xff] }
 0x1ff   : >> { %977 = vst.msk [vmem:[%s3710_s17 + $0x8] sm:$0xff] %vm975_vm3, %v960_v55 }
 0x201   : >> { %v3096_v52 = vpop.f32.mrb[0].mxu1 }
 0x202   : >> { %v965_v56 = vadd.f32 %v3096_v52, %v949_v2  ;;  %v894_v37 = vpop.f32.mrb[1].mxu1 }
 0x203   : >> { %v963_v39 = vadd.f32 %v947_v35, %v894_v37  ;;  %v3097_v40 = vpop.f32.mrb[2].mxu1 }
 0x204   : >> { %982 = vst.msk [vmem:[%s3710_s17 + $0x30] sm:$0xff] %vm975_vm3, %v965_v56  ;;  %v966_v41 = vadd.f32 %v3097_v40, %v950_v53  ;;  %v897_v42 = vpop.f32.mrb[3].mxu1 }
 0x205   : >> { %980 = vst.msk [vmem:[%s3710_s17 + $0x20] sm:$0xff] %vm975_vm3, %v963_v39  ;;  %v964_v48 = vadd.f32 %v948_v38, %v897_v42 }
 0x206   : >> { %983 = vst.msk [vmem:[%s3710_s17 + $0x38] sm:$0xff] %vm975_vm3, %v966_v41 }
 0x207   : >> { %981 = vst.msk [vmem:[%s3710_s17 + $0x28] sm:$0xff] %vm975_vm3, %v964_v48 }
 0x209   : >> { %v3100_v49 = vpop.f32.mrb[4].mxu1 }
 0x20a   : >> { %v969_v44 = vadd.f32 %v3100_v49, %v953_v43  ;;  %v910_v45 = vpop.f32.mrb[5].mxu1 }
 0x20b   : >> { %v967_v46 = vadd.f32 %v951_v50, %v910_v45  ;;  %v3101_v0 = vpop.f32.mrb[6].mxu1 }
 0x20c   : >> { %986 = vst.msk [vmem:[%s3710_s17 + $0x50] sm:$0xff] %vm975_vm3, %v969_v44  ;;  %v970_v1 = vadd.f32 %v3101_v0, %v954_v51  ;;  %v913_v3 = vpop.f32.mrb[7].mxu1 }
 0x20d   : >> { %984 = vst.msk [vmem:[%s3710_s17 + $0x40] sm:$0xff] %vm975_vm3, %v967_v46  ;;  %v968_v60 = vadd.f32 %v952_v63, %v913_v3 }
 0x20e   : >> { %987 = vst.msk [vmem:[%s3710_s17 + $0x58] sm:$0xff] %vm975_vm3, %v970_v1 }
 0x20f   : >> { %985 = vst.msk [vmem:[%s3710_s17 + $0x48] sm:$0xff] %vm975_vm3, %v968_v60 }
 0x211   : >> { %v3104_v4 = vpop.f32.mrb[8].mxu1  ;;  %408 = sbr.rel (!%p406_p10) target bundleno = 63 (0x3f), region = 139 }
 0x212   : >> { %v973_v58 = vadd.f32 %v3104_v4, %v957_v57  ;;  %v926_v59 = vpop.f32.mrb[9].mxu1 }
 0x213   : >> { %v971_v61 = vadd.f32 %v955_v36, %v926_v59  ;;  %v3105_v55 = vpop.f32.mrb[10].mxu1 }
 0x214   : >> { %990 = vst.msk [vmem:[%s3710_s17 + $0x70] sm:$0xff] %vm975_vm3, %v973_v58  ;;  %v974_v2 = vadd.f32 %v3105_v55, %v958_v47  ;;  %v929_v35 = vpop.f32.mrb[11].mxu1 }
 0x215   : >> { %988 = vst.msk [vmem:[%s3710_s17 + $0x60] sm:$0xff] %vm975_vm3, %v971_v61  ;;  %v972_v52 = vadd.f32 %v956_v54, %v929_v35 }
 0x216   : >> { %991 = vst.msk [vmem:[%s3710_s17 + $0x78] sm:$0xff] %vm975_vm3, %v974_v2 }
 0x217   : >> { %989 = vst.msk [vmem:[%s3710_s17 + $0x68] sm:$0xff] %vm975_vm3, %v972_v52 }
 0x218   : > { %995 = sbr.rel (%p2809_p11) target bundleno = 1258 (0x4ea), region = 104  ;;  %v1173_v35 = vld [vmem:[%s4375_s3] sm:$0xff] (!%p2809_p11)  ;;  %vm1338_vm4 = vcmask (!%p2809_p11), 130112   ;;  %vm1345_vm5 = vcmask (!%p2809_p11), 195712   ;;  %vm1352_vm6 = vcmask (!%p2809_p11), 261312   ;;  %vm1359_vm7 = vcmask (!%p2809_p11), 326912  }
 0x219   : > { %v1177_v52 = vld [vmem:[%s4375_s3 + $0x20] sm:$0xff] (!%p2809_p11)  ;;  %vm1366_vm8 = vcmask (!%p2809_p11), 392512   ;;  %vm1373_vm9 = vcmask (!%p2809_p11), 458112   ;;  %vm1380_vm10 = vcmask (!%p2809_p11), 523712   ;;  %vm1387_vm11 = vcmask (!%p2809_p11), 589312  }
 0x21a   : > { %vm1394_vm12 = vcmask (!%p2809_p11), 654912   ;;  %vm1401_vm13 = vcmask (!%p2809_p11), 720512   ;;  %vm1408_vm14 = vcmask (!%p2809_p11), 786112   ;;  %vm1415_vm15 = vcmask (!%p2809_p11), 851712  }
 0x21b   : > { %vm1422_vm0 = vcmask (!%p2809_p11), 917312   ;;  %vm1429_vm1 = vcmask (!%p2809_p11), 982912   ;;  %vm1436_vm2 = vcmask (!%p2809_p11), 1048512  }
 0x21e   : > { %v1012_v53 = vld [vmem:[#allocation2 + $0x80] sm:$0xff] (!%p2809_p11)  ;;  %v1013_v37 = vld [vmem:[#allocation2 + $0x88] sm:$0xff] (!%p2809_p11)  ;;  %v999_v48 = vld [vmem:[#allocation2 + $0x18] sm:$0xff] (!%p2809_p11) }
 0x21f   : > { %v996_v56 = vld [vmem:[#allocation2] sm:$0xff]  ;;  %v1077_v38 = vsel %vm975_vm3, %v1012_v53, 0.0  ;;  %v997_v40 = vld [vmem:[#allocation2 + $0x8] sm:$0xff]  ;;  %v1080_v41 = vsel %vm975_vm3, %v1013_v37, 0.0  ;;  %v998_v43 = vld [vmem:[#allocation2 + $0x10] sm:$0xff]  ;;  %v1038_v7 = vsel %vm975_vm3, %v999_v48, 0.0  ;;  %v2811_v37 = vcombine.high %v1173_v35, %v1177_v52 }
 0x220   : > { %v1029_v39 = vsel %vm975_vm3, %v996_v56, 0.0  ;;  %1078 = vadd.xlane.f32.xlu1 %v1077_v38  ;;  %v1032_v42 = vsel %vm975_vm3, %v997_v40, 0.0  ;;  %v1015_v5 = vld [vmem:[#allocation2 + $0x98] sm:$0xff]  ;;  %v1014_v6 = vld [vmem:[#allocation2 + $0x90] sm:$0xff]  ;;  %v1035_v8 = vsel %vm975_vm3, %v998_v43, 0.0  ;;  %v1001_v9 = vld [vmem:[#allocation2 + $0x28] sm:$0xff]  ;;  %v2810_v40 = vcombine.low %v1173_v35, %v1177_v52 }
 0x221   : > { %1030 = vadd.xlane.f32.xlu0 %v1029_v39  ;;  %v1000_v10 = vld [vmem:[#allocation2 + $0x20] sm:$0xff]  ;;  %v1017_v11 = vld [vmem:[#allocation2 + $0xa8] sm:$0xff]  ;;  %v1086_v13 = vsel %vm975_vm3, %v1015_v5, 0.0  ;;  %v1083_v14 = vsel %vm975_vm3, %v1014_v6, 0.0  ;;  %v1044_v15 = vsel %vm975_vm3, %v1001_v9, 0.0  ;;  %v1003_v19 = vld [vmem:[#allocation2 + $0x38] sm:$0xff]  ;;  %1841 = vmatprep.subr.bf16.mxu0 %v2811_v37 }
 0x222   : > { %v1016_v12 = vld [vmem:[#allocation2 + $0xa0] sm:$0xff]  ;;  %v1041_v16 = vsel %vm975_vm3, %v1000_v10, 0.0  ;;  %v1092_v17 = vsel %vm975_vm3, %v1017_v11, 0.0  ;;  %v1002_v20 = vld [vmem:[#allocation2 + $0x30] sm:$0xff]  ;;  %v1019_v21 = vld [vmem:[#allocation2 + $0xb8] sm:$0xff]  ;;  %v1050_v23 = vsel %vm975_vm3, %v1003_v19, 0.0  ;;  %1842 = vmatpush1.bf16.msra.mxu0 %v2810_v40 }
 0x223   : > { %v1089_v18 = vsel %vm975_vm3, %v1016_v12, 0.0  ;;  %v1018_v22 = vld [vmem:[#allocation2 + $0xb0] sm:$0xff]  ;;  %v1047_v24 = vsel %vm975_vm3, %v1002_v20, 0.0  ;;  %v1098_v25 = vsel %vm975_vm3, %v1019_v21, 0.0  ;;  %v1005_v27 = vld [vmem:[#allocation2 + $0x48] sm:$0xff]  ;;  %v1004_v28 = vld [vmem:[#allocation2 + $0x40] sm:$0xff] }
 0x224   : > { %1081 = vadd.xlane.f32.xlu1 %v1080_v41  ;;  %v1095_v26 = vsel %vm975_vm3, %v1018_v22, 0.0  ;;  %v1021_v29 = vld [vmem:[#allocation2 + $0xc8] sm:$0xff]  ;;  %v1020_v30 = vld [vmem:[#allocation2 + $0xc0] sm:$0xff]  ;;  %v1056_v31 = vsel %vm975_vm3, %v1005_v27, 0.0  ;;  %v1053_v32 = vsel %vm975_vm3, %v1004_v28, 0.0  ;;  %v1007_v50 = vld [vmem:[#allocation2 + $0x58] sm:$0xff] }
 0x225   : > { %1033 = vadd.xlane.f32.xlu0 %v1032_v42  ;;  %v1104_v33 = vsel %vm975_vm3, %v1021_v29, 0.0  ;;  %v1101_v34 = vsel %vm975_vm3, %v1020_v30, 0.0  ;;  %v1006_v49 = vld [vmem:[#allocation2 + $0x50] sm:$0xff]  ;;  %v1023_v51 = vld [vmem:[#allocation2 + $0xd8] sm:$0xff]  ;;  %v1062_v45 = vsel %vm975_vm3, %v1007_v50, 0.0  ;;  %v1009_v1 = vld [vmem:[#allocation2 + $0x68] sm:$0xff] }
 0x226   : > { %v1022_v44 = vld [vmem:[#allocation2 + $0xd0] sm:$0xff]  ;;  %v1059_v63 = vsel %vm975_vm3, %v1006_v49, 0.0  ;;  %v1110_v46 = vsel %vm975_vm3, %v1023_v51, 0.0  ;;  %v1008_v3 = vld [vmem:[#allocation2 + $0x60] sm:$0xff]  ;;  %v1025_v60 = vld [vmem:[#allocation2 + $0xe8] sm:$0xff]  ;;  %v1068_v57 = vsel %vm975_vm3, %v1009_v1, 0.0 }
 0x227   : > { %v1107_v0 = vsel %vm975_vm3, %v1022_v44, 0.0  ;;  %v1065_v36 = vsel %vm975_vm3, %v1008_v3, 0.0  ;;  %v1116_v4 = vsel %vm975_vm3, %v1025_v60, 0.0  ;;  %v1024_v47 = vld [vmem:[#allocation2 + $0xe0] sm:$0xff]  ;;  %v1011_v58 = vld [vmem:[#allocation2 + $0x78] sm:$0xff]  ;;  %v1010_v54 = vld [vmem:[#allocation2 + $0x70] sm:$0xff] }
 0x228   : > { %1039 = vadd.xlane.f32.xlu1 %v1038_v7  ;;  %v1113_v59 = vsel %vm975_vm3, %v1024_v47, 0.0  ;;  %v1074_v61 = vsel %vm975_vm3, %v1011_v58, 0.0  ;;  %v1027_v55 = vld [vmem:[#allocation2 + $0xf8] sm:$0xff]  ;;  %v1026_v2 = vld [vmem:[#allocation2 + $0xf0] sm:$0xff]  ;;  %v1174_v53 = vld [vmem:[%s4375_s3 + $0x8] sm:$0xff]  ;;  %v1071_v56 = vsel %vm975_vm3, %v1010_v54, 0.0 }
 0x229   : > { %1036 = vadd.xlane.f32.xlu0 %v1035_v8  ;;  %v1178_v38 = vld [vmem:[%s4375_s3 + $0x28] sm:$0xff]  ;;  %v1181_v42 = vld [vmem:[%s4375_s3 + $0x40] sm:$0xff]  ;;  %v1122_v5 = vsel %vm975_vm3, %v1027_v55, 0.0  ;;  %v1119_v6 = vsel %vm975_vm3, %v1026_v2, 0.0  ;;  %v3895_v37 = vld [vmem:[%s4375_s3 + $0x10] sm:$0xff]  ;;  %v3335_v40 = vmov 0  }
 0x22a   : > { %v2813_v39 = vcombine.high %v1174_v53, %v1178_v38  ;;  %v2812_v41 = vcombine.low %v1174_v53, %v1178_v38  ;;  %v1185_v48 = vld [vmem:[%s4375_s3 + $0x60] sm:$0xff]  ;;  %v1182_v43 = vld [vmem:[%s4375_s3 + $0x48] sm:$0xff]  ;;  %v3900_v38 = vld [vmem:[%s4375_s3 + $0x30] sm:$0xff]  ;;  %1873 = vmatprep.mubr.bf16.mxu0 %v3335_v40  ;;  %1914 = vmatprep.mubr.bf16.mxu1 %v3335_v40  ;;  %vm1517_vm3 = vcmask 1041409  }
 0x22b   : > { %v2819_v7 = vcombine.high %v1181_v42, %v1185_v48  ;;  %v1186_v8 = vld [vmem:[%s4375_s3 + $0x68] sm:$0xff]  ;;  %v2818_v10 = vcombine.low %v1181_v42, %v1185_v48  ;;  %v1189_v12 = vld [vmem:[%s4375_s3 + $0x80] sm:$0xff]  ;;  %v2815_v42 = vcombine.high %v3895_v37, %v3900_v38  ;;  %v3915_v48 = vld [vmem:[%s4375_s3 + $0x38] sm:$0xff] }
 0x22c   : > { %1087 = vadd.xlane.f32.xlu1 %v1086_v13  ;;  %1882 = vmatprep.subr.bf16.mxu1 %v2813_v39  ;;  %v2821_v9 = vcombine.high %v1182_v43, %v1186_v8  ;;  %v2820_v11 = vcombine.low %v1182_v43, %v1186_v8  ;;  %v1193_v13 = vld [vmem:[%s4375_s3 + $0xa0] sm:$0xff]  ;;  %v1198_v22 = vld [vmem:[%s4375_s3 + $0xc8] sm:$0xff]  ;;  %v3905_v39 = vld [vmem:[%s4375_s3 + $0x18] sm:$0xff] }
 0x22d   : > { %1084 = vadd.xlane.f32.xlu0 %v1083_v14  ;;  %1883 = vmatpush1.bf16.msra.mxu1 %v2812_v41  ;;  %v1190_v14 = vld [vmem:[%s4375_s3 + $0x88] sm:$0xff]  ;;  %v1197_v20 = vld [vmem:[%s4375_s3 + $0xc0] sm:$0xff]  ;;  %v2814_v41 = vcombine.low %v3895_v37, %v3900_v38  ;;  %v2816_v43 = vcombine.low %v3905_v39, %v3915_v48  ;;  %v1200_v37 = vld [vmem:[%s4375_s3 + $0xd8] sm:$0xff] }
 0x22e   : > { %1843 = vmatprep.subr.bf16.mxu0 %v2819_v7  ;;  %1884 = vmatprep.subr.bf16.mxu1 %v2821_v9  ;;  %v1201_v21 = vld [vmem:[%s4375_s3 + $0xe0] sm:$0xff]  ;;  %v1206_v30 = vld [vmem:[%s4375_s3 + $0x108] sm:$0xff]  ;;  %v1204_v38 = vld [vmem:[%s4375_s3 + $0xf8] sm:$0xff] }
 0x22f   : > { %1844 = vmatpush1.bf16.msra.mxu0 %v2818_v10  ;;  %v1205_v28 = vld [vmem:[%s4375_s3 + $0x100] sm:$0xff]  ;;  %v1214_v44 = vld [vmem:[%s4375_s3 + $0x148] sm:$0xff] }
 0x230   : > { %1045 = vadd.xlane.f32.xlu1 %v1044_v15  ;;  %v2827_v15 = vcombine.high %v1189_v12, %v1193_v13  ;;  %v1209_v29 = vld [vmem:[%s4375_s3 + $0x120] sm:$0xff]  ;;  %v1230_v55 = vld [vmem:[%s4375_s3 + $0x1c8] sm:$0xff] }
 0x231   : > { %1042 = vadd.xlane.f32.xlu0 %v1041_v16  ;;  %v1194_v16 = vld [vmem:[%s4375_s3 + $0xa8] sm:$0xff]  ;;  %1885 = vmatpush1.bf16.msra.mxu1 %v2820_v11  ;;  %v1213_v49 = vld [vmem:[%s4375_s3 + $0x140] sm:$0xff] }
 0x232   : > { %v2828_v19 = vcombine.low %v1190_v14, %v1194_v16  ;;  %1845 = vmatprep.subr.bf16.mxu0 %v2827_v15  ;;  %v1217_v51 = vld [vmem:[%s4375_s3 + $0x160] sm:$0xff]  ;;  %v1234_v35 = vld [vmem:[%s4375_s3 + $0x1e8] sm:$0xff] }
 0x233   : > { %v1221_v3 = vld [vmem:[%s4375_s3 + $0x180] sm:$0xff]  ;;  %v2869_v52 = vcombine.high %v1230_v55, %v1234_v35 }
 0x234   : > { %1093 = vadd.xlane.f32.xlu1 %v1092_v17  ;;  %v2829_v17 = vcombine.high %v1190_v14, %v1194_v16  ;;  %v1225_v60 = vld [vmem:[%s4375_s3 + $0x1a0] sm:$0xff]  ;;  %v4388_v16 = vlaneseq }
 0x235   : > { %1090 = vadd.xlane.f32.xlu0 %v1089_v18  ;;  %v2826_v18 = vcombine.low %v1189_v12, %v1193_v13  ;;  %v2858_v58 = vcombine.low %v1221_v3, %v1225_v60  ;;  %v1229_v54 = vld [vmem:[%s4375_s3 + $0x1c0] sm:$0xff] }
 0x236   : > { %1886 = vmatprep.subr.bf16.mxu1 %v2829_v17  ;;  %v3923_v17 = vand.u32 127, %v4388_v16 }
 0x237   : > { %1846 = vmatpush1.bf16.msra.mxu0 %v2826_v18  ;;  %1887 = vmatpush1.bf16.msra.mxu1 %v2828_v19 }
 0x238   : > { %1051 = vadd.xlane.f32.xlu1 %v1050_v23  ;;  %v2835_v23 = vcombine.high %v1197_v20, %v1201_v21 }
 0x239   : > { %1048 = vadd.xlane.f32.xlu0 %v1047_v24  ;;  %v1202_v24 = vld [vmem:[%s4375_s3 + $0xe8] sm:$0xff] }
 0x23a   : > { %v2836_v27 = vcombine.low %v1198_v22, %v1202_v24  ;;  %1847 = vmatprep.subr.bf16.mxu0 %v2835_v23 }
 0x23c   : > { %1099 = vadd.xlane.f32.xlu1 %v1098_v25  ;;  %v2837_v25 = vcombine.high %v1198_v22, %v1202_v24  ;;  %v1333_v22 = vadd.s32 4294967288, %v3923_v17 }
 0x23d   : > { %1096 = vadd.xlane.f32.xlu0 %v1095_v26  ;;  %v2834_v26 = vcombine.low %v1197_v20, %v1201_v21 }
 0x23e   : > { %1888 = vmatprep.subr.bf16.mxu1 %v2837_v25  ;;  %v1340_v25 = vadd.s32 4294967280, %v3923_v17 }
 0x23f   : > { %1848 = vmatpush1.bf16.msra.mxu0 %v2834_v26  ;;  %1889 = vmatpush1.bf16.msra.mxu1 %v2836_v27  ;;  %v1347_v26 = vadd.s32 4294967272, %v3923_v17 }
 0x240   : > { %1057 = vadd.xlane.f32.xlu1 %v1056_v31  ;;  %v2843_v31 = vcombine.high %v1205_v28, %v1209_v29 }
 0x241   : > { %1054 = vadd.xlane.f32.xlu0 %v1053_v32  ;;  %v1210_v32 = vld [vmem:[%s4375_s3 + $0x128] sm:$0xff] }
 0x242   : > { %v2844_v50 = vcombine.low %v1206_v30, %v1210_v32  ;;  %1849 = vmatprep.subr.bf16.mxu0 %v2843_v31 }
 0x244   : > { %1105 = vadd.xlane.f32.xlu1 %v1104_v33  ;;  %v2845_v33 = vcombine.high %v1206_v30, %v1210_v32 }
 0x245   : > { %1102 = vadd.xlane.f32.xlu0 %v1101_v34  ;;  %v2842_v34 = vcombine.low %v1205_v28, %v1209_v29 }
 0x246   : > { %1890 = vmatprep.subr.bf16.mxu1 %v2845_v33 }
 0x247   : > { %1850 = vmatpush1.bf16.msra.mxu0 %v2842_v34  ;;  %1891 = vmatpush1.bf16.msra.mxu1 %v2844_v50  ;;  %v1331_v34 = vsub.s32 %v3923_v17, %v3673_v62  ;;  %v1336_v50 = vsub.s32 %v1333_v22, %v3673_v62 }
 0x248   : > { %1063 = vadd.xlane.f32.xlu1 %v1062_v45  ;;  %v2851_v45 = vcombine.high %v1213_v49, %v1217_v51 }
 0x249   : > { %1060 = vadd.xlane.f32.xlu0 %v1059_v63  ;;  %v1218_v63 = vld [vmem:[%s4375_s3 + $0x168] sm:$0xff] }
 0x24a   : > { %v2852_v1 = vcombine.low %v1214_v44, %v1218_v63  ;;  %1851 = vmatprep.subr.bf16.mxu0 %v2851_v45  ;;  %v1343_v45 = vsub.s32 %v1340_v25, %v3673_v62 }
 0x24c   : > { %1111 = vadd.xlane.f32.xlu1 %v1110_v46  ;;  %v2853_v46 = vcombine.high %v1214_v44, %v1218_v63  ;;  %v1361_v44 = vadd.s32 4294967256, %v3923_v17 }
 0x24d   : > { %1108 = vadd.xlane.f32.xlu0 %v1107_v0  ;;  %v2850_v0 = vcombine.low %v1213_v49, %v1217_v51  ;;  %v1354_v51 = vadd.s32 4294967264, %v3923_v17 }
 0x24e   : > { %1892 = vmatprep.subr.bf16.mxu1 %v2853_v46  ;;  %v1368_v46 = vadd.s32 4294967248, %v3923_v17 }
 0x24f   : > { %1852 = vmatpush1.bf16.msra.mxu0 %v2850_v0  ;;  %1893 = vmatpush1.bf16.msra.mxu1 %v2852_v1  ;;  %v1375_v0 = vadd.s32 4294967240, %v3923_v17 }
 0x250   : > { %1069 = vadd.xlane.f32.xlu1 %v1068_v57  ;;  %v1222_v57 = vld [vmem:[%s4375_s3 + $0x188] sm:$0xff] }
 0x251   : > { %1066 = vadd.xlane.f32.xlu0 %v1065_v36  ;;  %v2859_v36 = vcombine.high %v1221_v3, %v1225_v60 }
 0x253   : > { %1853 = vmatprep.subr.bf16.mxu0 %v2859_v36  ;;  %v1350_v36 = vsub.s32 %v1347_v26, %v3673_v62 }
 0x254   : > { %1117 = vadd.xlane.f32.xlu1 %v1116_v4  ;;  %v1226_v4 = vld [vmem:[%s4375_s3 + $0x1a8] sm:$0xff]  ;;  %1854 = vmatpush1.bf16.msra.mxu0 %v2858_v58 }
 0x255   : > { %1114 = vadd.xlane.f32.xlu0 %v1113_v59  ;;  %v2861_v47 = vcombine.high %v1222_v57, %v1226_v4  ;;  %v2860_v59 = vcombine.low %v1222_v57, %v1226_v4 }
 0x257   : > { %1894 = vmatprep.subr.bf16.mxu1 %v2861_v47 }
 0x258   : > { %1075 = vadd.xlane.f32.xlu1 %v1074_v61  ;;  %v1233_v61 = vld [vmem:[%s4375_s3 + $0x1e0] sm:$0xff]  ;;  %1895 = vmatpush1.bf16.msra.mxu1 %v2860_v59 }
 0x259   : > { %1072 = vadd.xlane.f32.xlu0 %v1071_v56  ;;  %v2867_v2 = vcombine.high %v1229_v54, %v1233_v61  ;;  %v2866_v53 = vcombine.low %v1229_v54, %v1233_v61  ;;  %v2868_v56 = vcombine.low %v1230_v55, %v1234_v35  ;;  %1896 = vmatprep.subr.bf16.mxu1 %v2869_v52 }
 0x25a   : > { %v3939_v35 = vsub.s32 %v1361_v44, %v3673_v62 }
 0x25b   : > { %1855 = vmatprep.subr.bf16.mxu0 %v2867_v2  ;;  %v1357_v2 = vsub.s32 %v1354_v51, %v3673_v62 }
 0x25c   : > { %1123 = vadd.xlane.f32.xlu1 %v1122_v5  ;;  %v2817_v5 = vcombine.high %v3905_v39, %v3915_v48  ;;  %1856 = vmatpush1.bf16.msra.mxu0 %v2866_v53  ;;  %v3942_v53 = vsub.s32 %v1368_v46, %v3673_v62 }
 0x25d   : > { %1120 = vadd.xlane.f32.xlu0 %v1119_v6  ;;  %1897 = vmatpush1.bf16.msra.mxu1 %v2868_v56  ;;  %v3945_v56 = vsub.s32 %v1375_v0, %v3673_v62 }
 0x25e   : > { %1923 = vmatprep.subr.bf16.mxu0 %v2815_v42  ;;  %1964 = vmatprep.subr.bf16.mxu1 %v2817_v5  ;;  %v1382_v5 = vadd.s32 4294967232, %v3923_v17 }
 0x2ad   : > { %v1079_v6 = vpop.xlane.xlu1 %1078 }
 0x2ae   : > { %v1031_v7 = vpop.xlane.xlu0 %1030  ;;  %v1141_v21 = vmul.f32 0.00048828125, %v1079_v6 }
 0x2af   : > { %v1125_v30 = vmul.f32 0.00048828125, %v1031_v7 }
 0x2b1   : > { %v1082_v8 = vpop.xlane.xlu1 %1081 }
 0x2b2   : > { %v1034_v9 = vpop.xlane.xlu0 %1033  ;;  %v1142_v20 = vmul.f32 0.00048828125, %v1082_v8  ;;  %v1389_v8 = vadd.s32 4294967224, %v3923_v17 }
 0x2b3   : > { %v1126_v23 = vmul.f32 0.00048828125, %v1034_v9  ;;  %v1396_v9 = vadd.s32 4294967216, %v3923_v17 }
 0x2b4   : > { %v1165_v31 = vpack.c.bf16 %v1142_v20, %v1141_v21 }
 0x2b5   : > { %v1040_v10 = vpop.xlane.xlu1 %1039  ;;  %v1157_v49 = vpack.c.bf16 %v1126_v23, %v1125_v30  ;;  %v3955_v30 = vsub.s32 %v1389_v8, %v3673_v62 }
 0x2b6   : > { %v1037_v11 = vpop.xlane.xlu0 %1036  ;;  %v1128_v24 = vmul.f32 0.00048828125, %v1040_v10  ;;  %v1311_v60 = vunpack.c.l.b16 %v1165_v31  ;;  %v1312_v57 = vunpack.c.h.b16 %v1165_v31  ;;  %v1403_v10 = vadd.s32 4294967208, %v3923_v17 }
 0x2b7   : > { %v1127_v27 = vmul.f32 0.00048828125, %v1037_v11  ;;  %v1295_v61 = vunpack.c.l.b16 %v1157_v49  ;;  %v1296_v55 = vunpack.c.h.b16 %v1157_v49  ;;  %v3958_v31 = vsub.s32 %v1396_v9, %v3673_v62 }
 0x2b8   : > { %v1441_v7 = vrot.slane %v1311_v60, %v1331_v34  ;;  %v1445_v11 = vrot.slane %v1312_v57, %v1336_v50  ;;  %v1417_v9 = vadd.s32 4294967192, %v3923_v17 }
 0x2b9   : > { %v1088_v12 = vpop.xlane.xlu1 %1087  ;;  %v1158_v63 = vpack.c.bf16 %v1128_v24, %v1127_v27  ;;  %v1337_v16 = vrot.slane %v1296_v55, %v1336_v50  ;;  %v3952_v27 = vsub.s32 %v1382_v5, %v3673_v62 }
 0x2ba   : > { %v1085_v13 = vpop.xlane.xlu0 %1084  ;;  %v1144_v32 = vmul.f32 0.00048828125, %v1088_v12  ;;  %v1446_v44 = vsel %vm1338_vm4, %v1445_v11, %v1441_v7 }
 0x2bb   : > { %v1143_v33 = vmul.f32 0.00048828125, %v1085_v13  ;;  %v1297_v52 = vunpack.c.l.b16 %v1158_v63  ;;  %v1298_v20 = vunpack.c.h.b16 %v1158_v63 }
 0x2bd   : > { %v1046_v14 = vpop.xlane.xlu1 %1045  ;;  %v1166_v4 = vpack.c.bf16 %v1144_v32, %v1143_v33  ;;  %v1344_v21 = vrot.slane %v1297_v52, %v1343_v45  ;;  %v1351_v46 = vrot.slane %v1298_v20, %v1350_v36 }
 0x2be   : > { %v1043_v15 = vpop.xlane.xlu0 %1042  ;;  %v1130_v47 = vmul.f32 0.00048828125, %v1046_v14 }
 0x2bf   : > { %v1129_v58 = vmul.f32 0.00048828125, %v1043_v15  ;;  %v1313_v12 = vunpack.c.l.b16 %v1166_v4  ;;  %v1332_v15 = vrot.slane %v1295_v61, %v1331_v34  ;;  %v1314_v26 = vunpack.c.h.b16 %v1166_v4 }
 0x2c1   : > { %v1094_v18 = vpop.xlane.xlu1 %1093  ;;  %v1159_v13 = vpack.c.bf16 %v1130_v47, %v1129_v58  ;;  %v1450_v32 = vrot.slane %v1313_v12, %v1343_v45  ;;  %v1339_v34 = vsel %vm1338_vm4, %v1337_v16, %v1332_v15 }
 0x2c2   : > { %v1091_v19 = vpop.xlane.xlu0 %1090  ;;  %v1146_v59 = vmul.f32 0.00048828125, %v1094_v18  ;;  %v1346_v63 = vsel %vm1345_vm5, %v1344_v21, %v1339_v34 }
 0x2c3   : > { %v1145_v54 = vmul.f32 0.00048828125, %v1091_v19  ;;  %v1299_v33 = vunpack.c.l.b16 %v1159_v13  ;;  %v1300_v60 = vunpack.c.h.b16 %v1159_v13  ;;  %v1451_v47 = vsel %vm1345_vm5, %v1450_v32, %v1446_v44 }
 0x2c4   : > { %v1353_v5 = vsel %vm1352_vm6, %v1351_v46, %v1346_v63 }
 0x2c5   : > { %v1052_v28 = vpop.xlane.xlu1 %1051  ;;  %v1167_v14 = vpack.c.bf16 %v1146_v59, %v1145_v54  ;;  %v1358_v58 = vrot.slane %v1299_v33, %v1357_v2  ;;  %v1365_v11 = vrot.slane %v1300_v60, %v3939_v35 }
 0x2c6   : > { %v1049_v29 = vpop.xlane.xlu0 %1048  ;;  %v1132_v18 = vmul.f32 0.00048828125, %v1052_v28 }
 0x2c7   : > { %v1131_v19 = vmul.f32 0.00048828125, %v1049_v29  ;;  %v1315_v28 = vunpack.c.l.b16 %v1167_v14  ;;  %v3961_v29 = vsub.s32 %v1403_v10, %v3673_v62  ;;  %v1316_v59 = vunpack.c.h.b16 %v1167_v14 }
 0x2c8   : > { %v1360_v13 = vsel %vm1359_vm7, %v1358_v58, %v1353_v5 }
 0x2c9   : > { %v1100_v1 = vpop.xlane.xlu1 %1099  ;;  %v1160_v50 = vpack.c.bf16 %v1132_v18, %v1131_v19  ;;  %v1460_v54 = vrot.slane %v1315_v28, %v1357_v2  ;;  %v1465_v14 = vrot.slane %v1316_v59, %v3939_v35 }
 0x2ca   : > { %v1097_v3 = vpop.xlane.xlu0 %1096  ;;  %v1148_v22 = vmul.f32 0.00048828125, %v1100_v1 }
 0x2cb   : > { %v1147_v23 = vmul.f32 0.00048828125, %v1097_v3  ;;  %v1455_v3 = vrot.slane %v1314_v26, %v1350_v36  ;;  %v1301_v61 = vunpack.c.l.b16 %v1160_v50  ;;  %v1410_v36 = vadd.s32 4294967200, %v3923_v17 }
 0x2cc   : > { %v1302_v15 = vunpack.c.h.b16 %v1160_v50  ;;  %v3979_v26 = vsub.s32 %v1417_v9, %v3673_v62  ;;  %v1367_v50 = vsel %vm1366_vm8, %v1365_v11, %v1360_v13 }
 0x2cd   : > { %v1058_v42 = vpop.xlane.xlu1 %1057  ;;  %v1168_v0 = vpack.c.bf16 %v1148_v22, %v1147_v23  ;;  %v1456_v10 = vsel %vm1352_vm6, %v1455_v3, %v1451_v47  ;;  %v1372_v19 = vrot.slane %v1301_v61, %v3942_v53 }
 0x2ce   : > { %v1055_v6 = vpop.xlane.xlu0 %1054  ;;  %v1134_v49 = vmul.f32 0.00048828125, %v1058_v42  ;;  %v1461_v18 = vsel %vm1359_vm7, %v1460_v54, %v1456_v10 }
 0x2cf   : > { %v1133_v51 = vmul.f32 0.00048828125, %v1055_v6  ;;  %v1317_v6 = vunpack.c.l.b16 %v1168_v0  ;;  %v1318_v22 = vunpack.c.h.b16 %v1168_v0 }
 0x2d1   : > { %v1106_v24 = vpop.xlane.xlu1 %1105  ;;  %v1161_v55 = vpack.c.bf16 %v1134_v49, %v1133_v51  ;;  %v1470_v23 = vrot.slane %v1317_v6, %v3942_v53  ;;  %v1466_v49 = vsel %vm1366_vm8, %v1465_v14, %v1461_v18  ;;  %v1379_v51 = vrot.slane %v1302_v15, %v3945_v56 }
 0x2d2   : > { %v1103_v25 = vpop.xlane.xlu0 %1102  ;;  %v1150_v57 = vmul.f32 0.00048828125, %v1106_v24  ;;  %v1374_v53 = vsel %vm1373_vm9, %v1372_v19, %v1367_v50 }
 0x2d3   : > { %v1149_v4 = vmul.f32 0.00048828125, %v1103_v25  ;;  %v1303_v20 = vunpack.c.l.b16 %v1161_v55  ;;  %v1413_v25 = vsub.s32 %v1410_v36, %v3673_v62  ;;  %v1304_v44 = vunpack.c.h.b16 %v1161_v55 }
 0x2d4   : > { %v1381_v61 = vsel %vm1380_vm10, %v1379_v51, %v1374_v53 }
 0x2d5   : > { %v1064_v1 = vpop.xlane.xlu1 %1063  ;;  %v1169_v2 = vpack.c.bf16 %v1150_v57, %v1149_v4  ;;  %v1386_v63 = vrot.slane %v1303_v20, %v3952_v27  ;;  %v1424_v4 = vadd.s32 4294967184, %v3923_v17  ;;  %v1393_v55 = vrot.slane %v1304_v44, %v3955_v30 }
 0x2d6   : > { %v1061_v45 = vpop.xlane.xlu0 %1060  ;;  %v1136_v52 = vmul.f32 0.00048828125, %v1064_v1  ;;  %v1471_v1 = vsel %vm1373_vm9, %v1470_v23, %v1466_v49 }
 0x2d7   : > { %v1135_v42 = vmul.f32 0.00048828125, %v1061_v45  ;;  %v1319_v32 = vunpack.c.l.b16 %v1169_v2  ;;  %v1475_v45 = vrot.slane %v1318_v22, %v3945_v56  ;;  %v1320_v3 = vunpack.c.h.b16 %v1169_v2 }
 0x2d8   : > { %v1388_v5 = vsel %vm1387_vm11, %v1386_v63, %v1381_v61  ;;  %v1184_v61 = vld [vmem:[%s4375_s3 + $0x58] sm:$0xff] }
 0x2d9   : > { %v1112_v7 = vpop.xlane.xlu1 %1111  ;;  %v1162_v21 = vpack.c.bf16 %v1136_v52, %v1135_v42  ;;  %v1480_v47 = vrot.slane %v1319_v32, %v3952_v27  ;;  %v1431_v42 = vadd.s32 4294967176, %v3923_v17  ;;  %v1485_v27 = vrot.slane %v1320_v3, %v3955_v30 }
 0x2da   : > { %v1109_v8 = vpop.xlane.xlu0 %1108  ;;  %v1152_v12 = vmul.f32 0.00048828125, %v1112_v7  ;;  %v1395_v13 = vsel %vm1394_vm12, %v1393_v55, %v1388_v5  ;;  %v1427_v30 = vsub.s32 %v1424_v4, %v3673_v62  ;;  %v1188_v55 = vld [vmem:[%s4375_s3 + $0x78] sm:$0xff] }
 0x2db   : > { %v1151_v16 = vmul.f32 0.00048828125, %v1109_v8  ;;  %v1305_v46 = vunpack.c.l.b16 %v1162_v21  ;;  %v1306_v52 = vunpack.c.h.b16 %v1162_v21  ;;  %v1476_v8 = vsel %vm1380_vm10, %v1475_v45, %v1471_v1 }
 0x2dc   : > { %v1481_v11 = vsel %vm1387_vm11, %v1480_v47, %v1476_v8  ;;  %v1434_v20 = vsub.s32 %v1431_v42, %v3673_v62  ;;  %v1191_v8 = vld [vmem:[%s4375_s3 + $0x90] sm:$0xff] }
 0x2dd   : > { %v1070_v24 = vpop.xlane.xlu1 %1069  ;;  %v1170_v33 = vpack.c.bf16 %v1152_v12, %v1151_v16  ;;  %v1400_v56 = vrot.slane %v1305_v46, %v3958_v31  ;;  %v1407_v14 = vrot.slane %v1306_v52, %v3961_v29  ;;  %v1486_v21 = vsel %vm1394_vm12, %v1485_v27, %v1481_v11  ;;  %v1195_v27 = vld [vmem:[%s4375_s3 + $0xb0] sm:$0xff] }
 0x2de   : > { %v1067_v35 = vpop.xlane.xlu0 %1066  ;;  %v1138_v28 = vmul.f32 0.00048828125, %v1070_v24  ;;  %v2824_v11 = vcombine.low %v1184_v61, %v1188_v55  ;;  %v2830_v39 = vcombine.low %v1191_v8, %v1195_v27 }
 0x2df   : > { %v1137_v34 = vmul.f32 0.00048828125, %v1067_v35  ;;  %v1321_v58 = vunpack.c.l.b16 %v1170_v33  ;;  %v1322_v36 = vunpack.c.h.b16 %v1170_v33  ;;  %v1402_v18 = vsel %vm1401_vm13, %v1400_v56, %v1395_v13  ;;  %v1203_v13 = vld [vmem:[%s4375_s3 + $0xf0] sm:$0xff] }
 0x2e0   : > { %v1409_v50 = vsel %vm1408_vm14, %v1407_v14, %v1402_v18  ;;  %v1207_v14 = vld [vmem:[%s4375_s3 + $0x110] sm:$0xff] }
 0x2e1   : > { %v1163_v0 = vpack.c.bf16 %v1138_v28, %v1137_v34  ;;  %v1118_v60 = vpop.xlane.xlu1 %1117  ;;  %v1490_v2 = vrot.slane %v1321_v58, %v3958_v31  ;;  %v1495_v22 = vrot.slane %v1322_v36, %v3961_v29  ;;  %v1192_v36 = vld [vmem:[%s4375_s3 + $0x98] sm:$0xff] }
 0x2e2   : > { %v1115_v57 = vpop.xlane.xlu0 %1114  ;;  %v1154_v59 = vmul.f32 0.00048828125, %v1118_v60 }
 0x2e3   : > { %v1153_v54 = vmul.f32 0.00048828125, %v1115_v57  ;;  %v1307_v6 = vunpack.c.l.b16 %v1163_v0  ;;  %v1308_v15 = vunpack.c.h.b16 %v1163_v0  ;;  %v1491_v32 = vsel %vm1401_vm13, %v1490_v2, %v1486_v21  ;;  %v1215_v21 = vld [vmem:[%s4375_s3 + $0x150] sm:$0xff] }
 0x2e4   : > { %v1496_v29 = vsel %vm1408_vm14, %v1495_v22, %v1491_v32  ;;  %v2831_v2 = vcombine.high %v1191_v8, %v1195_v27  ;;  %v1219_v22 = vld [vmem:[%s4375_s3 + $0x170] sm:$0xff]  ;;  %v3198_v8 = vld [vmem:[%s4377_s5 + $0xd8] sm:$0xff]  }
 0x2e5   : > { %v1171_v7 = vpack.c.bf16 %v1154_v59, %v1153_v54  ;;  %v1076_v9 = vpop.xlane.xlu1 %1075  ;;  %v1414_v19 = vrot.slane %v1307_v6, %v1413_v25  ;;  %v1421_v49 = vrot.slane %v1308_v15, %v3979_v26  ;;  %v1187_v54 = vld [vmem:[%s4375_s3 + $0x70] sm:$0xff]  ;;  %v2855_v32 = vcombine.high %v1215_v21, %v1219_v22  ;;  %v3199_v27 = vld [vmem:[%s4377_s5 + $0x18] sm:$0xff]  }
 0x2e6   : > { %v1073_v10 = vpop.xlane.xlu0 %1072  ;;  %v1140_v17 = vmul.f32 0.00048828125, %v1076_v9  ;;  %v1196_v9 = vld [vmem:[%s4375_s3 + $0xb8] sm:$0xff]  ;;  %v1211_v15 = vld [vmem:[%s4375_s3 + $0x130] sm:$0xff] }
 0x2e7   : > { %v1323_v12 = vunpack.c.l.b16 %v1171_v7  ;;  %v1139_v16 = vmul.f32 0.00048828125, %v1073_v10  ;;  %v1324_v31 = vunpack.c.h.b16 %v1171_v7  ;;  %v1416_v53 = vsel %vm1415_vm15, %v1414_v19, %v1409_v50  ;;  %v1224_v50 = vld [vmem:[%s4375_s3 + $0x198] sm:$0xff] }
 0x2e8   : > { %v1423_v3 = vsel %vm1422_vm0, %v1421_v49, %v1416_v53  ;;  %v2825_v7 = vcombine.high %v1184_v61, %v1188_v55  ;;  %v2840_v19 = vcombine.low %v1200_v37, %v1204_v38  ;;  %v1228_v49 = vld [vmem:[%s4375_s3 + $0x1b8] sm:$0xff]  ;;  %v3190_v61 = vld [vmem:[%s4377_s5 + $0xc8] sm:$0xff]  }
 0x2e9   : > { %v1164_v23 = vpack.c.bf16 %v1140_v17, %v1139_v16  ;;  %v1124_v24 = vpop.xlane.xlu1 %1123  ;;  %v1500_v33 = vrot.slane %v1323_v12, %v1413_v25  ;;  %v1505_v46 = vrot.slane %v1324_v31, %v3979_v26  ;;  %v1183_v26 = vld [vmem:[%s4375_s3 + $0x50] sm:$0xff]  ;;  %v2833_v12 = vcombine.high %v1192_v36, %v1196_v9  ;;  %v1212_v16 = vld [vmem:[%s4375_s3 + $0x138] sm:$0xff]  ;;  %v3191_v55 = vld [vmem:[%s4377_s5 + $0x8] sm:$0xff]  }
 0x2ea   : > { %v1121_v35 = vpop.xlane.xlu0 %1120  ;;  %v1156_v28 = vmul.f32 0.00048828125, %v1124_v24  ;;  %v2823_v6 = vcombine.high %v1183_v26, %v1187_v54  ;;  %v2822_v10 = vcombine.low %v1183_v26, %v1187_v54  ;;  %v1199_v17 = vld [vmem:[%s4375_s3 + $0xd0] sm:$0xff]  ;;  %v1216_v31 = vld [vmem:[%s4375_s3 + $0x158] sm:$0xff]  ;;  %v2846_v24 = vcombine.low %v1207_v14, %v1211_v15  ;;  %v3187_v26 = vld [vmem:[%s4377_s5] sm:$0xff]  }
 0x2eb   : > { %v1155_v34 = vmul.f32 0.00048828125, %v1121_v35  ;;  %v1309_v51 = vunpack.c.l.b16 %v1164_v23  ;;  %v1310_v44 = vunpack.c.h.b16 %v1164_v23  ;;  %v1501_v25 = vsel %vm1415_vm15, %v1500_v33, %v1496_v29  ;;  %v1220_v23 = vld [vmem:[%s4375_s3 + $0x178] sm:$0xff]  ;;  %v1231_v29 = vld [vmem:[%s4375_s3 + $0x1d0] sm:$0xff]  ;;  %v3189_v54 = vld [vmem:[%s4377_s5 + $0x48] sm:$0xff]  }
 0x2ec   : > { %v1506_v58 = vsel %vm1422_vm0, %v1505_v46, %v1501_v25  ;;  %v2839_v48 = vcombine.high %v1199_v17, %v1203_v13  ;;  %v2838_v18 = vcombine.low %v1199_v17, %v1203_v13  ;;  %v2857_v33 = vcombine.high %v1216_v31, %v1220_v23  ;;  %v1235_v46 = vld [vmem:[%s4375_s3 + $0x1f0] sm:$0xff]  ;;  %v1236_v25 = vld [vmem:[%s4375_s3 + $0x1f8] sm:$0xff]  ;;  %v3206_v17 = vld [vmem:[%s4377_s5 + $0xe8] sm:$0xff]  }
 0x2ed   : > { %v1172_v63 = vpack.c.bf16 %v1156_v28, %v1155_v34  ;;  %v1428_v0 = vrot.slane %v1309_v51, %v1427_v30  ;;  %v1435_v60 = vrot.slane %v1310_v44, %v1434_v20  ;;  %v1223_v28 = vld [vmem:[%s4375_s3 + $0x190] sm:$0xff]  ;;  %v2854_v51 = vcombine.low %v1215_v21, %v1219_v22  ;;  %v3207_v13 = vld [vmem:[%s4377_s5 + $0x28] sm:$0xff]  }
 0x2ee   : > { %v1227_v34 = vld [vmem:[%s4375_s3 + $0x1b0] sm:$0xff]  ;;  %v2856_v44 = vcombine.low %v1216_v31, %v1220_v23  ;;  %v1245_v21 = vsub.s32 1, %v3673_v62  ;;  %v1253_v22 = vsub.s32 3, %v3673_v62 }
 0x2ef   : > { %v1325_v1 = vunpack.c.l.b16 %v1172_v63  ;;  %v1326_v45 = vunpack.c.h.b16 %v1172_v63  ;;  %v1430_v57 = vsel %vm1429_vm1, %v1428_v0, %v1423_v3  ;;  %v2863_v53 = vcombine.high %v1223_v28, %v1227_v34  ;;  %v1232_v0 = vld [vmem:[%s4375_s3 + $0x1d8] sm:$0xff] }
 0x2f0   : > { %v1437_v52 = vsel %vm1436_vm2, %v1435_v60, %v1430_v57  ;;  %v2865_v63 = vcombine.high %v1224_v50, %v1228_v49  ;;  %v2871_v3 = vcombine.high %v1231_v29, %v1235_v46  ;;  %v2873_v60 = vcombine.high %v1232_v0, %v1236_v25 }
 0x2f1   : > { %v1510_v4 = vrot.slane %v1325_v1, %v1427_v30  ;;  %v1515_v47 = vrot.slane %v1326_v45, %v1434_v20  ;;  %v2847_v30 = vcombine.high %v1207_v14, %v1211_v15  ;;  %v2862_v1 = vcombine.low %v1223_v28, %v1227_v34  ;;  %v3214_v14 = vld [vmem:[%s4377_s5 + $0xf8] sm:$0xff]  }
 0x2f2   : > { %v2864_v45 = vcombine.low %v1224_v50, %v1228_v49  ;;  %v2870_v57 = vcombine.low %v1231_v29, %v1235_v46  ;;  %v3215_v15 = vld [vmem:[%s4377_s5 + $0x38] sm:$0xff]  }
 0x2f3   : > { %v1511_v59 = vsel %vm1429_vm1, %v1510_v4, %v1506_v58  ;;  %v2872_v4 = vcombine.low %v1232_v0, %v1236_v25  ;;  %v3186_v58 = vld [vmem:[%s4377_s5 + $0xc0] sm:$0xff]  }
 0x2f4   : > { %v1516_v42 = vsel %vm1436_vm2, %v1515_v47, %v1511_v59  ;;  %v3185_v47 = vld [vmem:[%s4377_s5 + $0x40] sm:$0xff]  }
 0x2f5   : > { %v1518_v5 = vsel %vm1517_vm3, %v1516_v42, %v1437_v52  ;;  %v3188_v59 = vld [vmem:[%s4377_s5 + $0x80] sm:$0xff]   ;;  %v3192_v52 = vld [vmem:[%s4377_s5 + $0x88] sm:$0xff]   ;;  %v3193_v42 = vld [vmem:[%s4377_s5 + $0x50] sm:$0xff]  }
 0x2f6   : > { %v4027_v56 = vpack.c.b16 %v1518_v5, %v1518_v5  ;;  %v3194_v5 = vld [vmem:[%s4377_s5 + $0xd0] sm:$0xff]  }
 0x2f8   : > { %1874 = vmatmul.mubr.bf16.vlgmr.msra.gmra.mrb[0].mxu0 %v4027_v56  ;;  %1915 = vmatmul.mubr.bf16.vlgmr.msra.gmra.mrb[0].mxu1 %v4027_v56 }
 0x2f9   : > { %1924 = vmatpush1.bf16.msra.mxu0 %v2814_v41  ;;  %1965 = vmatpush1.bf16.msra.mxu1 %v2816_v43  ;;  %v2832_v41 = vcombine.low %v1192_v36, %v1196_v9  ;;  %v2841_v43 = vcombine.high %v1200_v37, %v1204_v38  ;;  %v3200_v36 = vld [vmem:[%s4377_s5 + $0x98] sm:$0xff]   ;;  %v3201_v9 = vld [vmem:[%s4377_s5 + $0x60] sm:$0xff]   ;;  %v3208_v37 = vld [vmem:[%s4377_s5 + $0xa8] sm:$0xff]  }
 0x2fa   : > { %1925 = vmatprep.subr.bf16.mxu0 %v2823_v6  ;;  %1966 = vmatprep.subr.bf16.mxu1 %v2825_v7  ;;  %v3196_v6 = vld [vmem:[%s4377_s5 + $0x90] sm:$0xff]   ;;  %v3197_v7 = vld [vmem:[%s4377_s5 + $0x58] sm:$0xff]  }
 0x2fb   : > { %1955 = vmatprep.mubr.bf16.mxu0 %v3335_v40  ;;  %1996 = vmatprep.mubr.bf16.mxu1 %v3335_v40  ;;  %v1208_v40 = vld [vmem:[%s4375_s3 + $0x118] sm:$0xff]  ;;  %v3209_v38 = vld [vmem:[%s4377_s5 + $0x70] sm:$0xff]  }
 0x2fc   : > { %v2849_v20 = vcombine.high %v1208_v40, %v1212_v16  ;;  %v2848_v35 = vcombine.low %v1208_v40, %v1212_v16  ;;  %v3216_v40 = vld [vmem:[%s4377_s5 + $0xb8] sm:$0xff]   ;;  %v3217_v16 = vld [vmem:[%s4377_s5 + $0x140] sm:$0xff]  }
 0x2fd   : > { %1926 = vmatpush1.bf16.msra.mxu0 %v2822_v10  ;;  %1967 = vmatpush1.bf16.msra.mxu1 %v2824_v11  ;;  %v3202_v10 = vld [vmem:[%s4377_s5 + $0xe0] sm:$0xff]  }
 0x2fe   : > { %1927 = vmatprep.subr.bf16.mxu0 %v2831_v2  ;;  %1968 = vmatprep.subr.bf16.mxu1 %v2833_v12  ;;  %v3203_v11 = vld [vmem:[%s4377_s5 + $0x20] sm:$0xff]   ;;  %v3205_v12 = vld [vmem:[%s4377_s5 + $0x68] sm:$0xff]  }
 0x2ff   : > { %v3204_v2 = vld [vmem:[%s4377_s5 + $0xa0] sm:$0xff]  }
 0x301   : > { %1928 = vmatpush1.bf16.msra.mxu0 %v2830_v39  ;;  %1969 = vmatpush1.bf16.msra.mxu1 %v2832_v41  ;;  %v3210_v39 = vld [vmem:[%s4377_s5 + $0xf0] sm:$0xff]  }
 0x302   : > { %1929 = vmatprep.subr.bf16.mxu0 %v2839_v48  ;;  %1970 = vmatprep.subr.bf16.mxu1 %v2841_v43  ;;  %v3211_v41 = vld [vmem:[%s4377_s5 + $0x30] sm:$0xff]   ;;  %v3213_v43 = vld [vmem:[%s4377_s5 + $0x78] sm:$0xff]  }
 0x303   : > { %v3212_v48 = vld [vmem:[%s4377_s5 + $0xb0] sm:$0xff]  }
 0x305   : > { %1930 = vmatpush1.bf16.msra.mxu0 %v2838_v18  ;;  %1971 = vmatpush1.bf16.msra.mxu1 %v2840_v19  ;;  %v3218_v18 = vld [vmem:[%s4377_s5 + $0x1c0] sm:$0xff]   ;;  %v1241_v19 = vsub.s32 0, %v3673_v62 }
 0x306   : > { %1931 = vmatprep.subr.bf16.mxu0 %v2847_v30  ;;  %1972 = vmatprep.subr.bf16.mxu1 %v2849_v20  ;;  %v1249_v30 = vsub.s32 2, %v3673_v62  ;;  %v4220_v20 = vld [vmem:[%s4376_s4] sm:$0xff] }
 0x307   : > { %v1242_v31 = vrot.slane %v4220_v20, %v1241_v19  ;;  %v3248_v19 = vld [vmem:[%s4377_s5 + $0x1b8] sm:$0xff]  }
 0x308   : > { %v1250_v23 = vrot.slane %v4220_v20, %v1249_v30 }
 0x309   : > { %1932 = vmatpush1.bf16.msra.mxu0 %v2846_v24  ;;  %1973 = vmatpush1.bf16.msra.mxu1 %v2848_v35  ;;  %v1246_v24 = vrot.slane %v4220_v20, %v1245_v21  ;;  %v1254_v35 = vrot.slane %v4220_v20, %v1253_v22 }
 0x30a   : > { %1933 = vmatprep.subr.bf16.mxu0 %v2855_v32  ;;  %1974 = vmatprep.subr.bf16.mxu1 %v2857_v33 }
 0x30d   : > { %1934 = vmatpush1.bf16.msra.mxu0 %v2854_v51  ;;  %1975 = vmatpush1.bf16.msra.mxu1 %v2856_v44 }
 0x30e   : > { %1935 = vmatprep.subr.bf16.mxu0 %v2863_v53  ;;  %1976 = vmatprep.subr.bf16.mxu1 %v2865_v63 }
 0x311   : > { %1936 = vmatpush1.bf16.msra.mxu0 %v2862_v1  ;;  %1977 = vmatpush1.bf16.msra.mxu1 %v2864_v45  ;;  %v3219_v1 = vld [vmem:[%s4377_s5 + $0x100] sm:$0xff]  }
 0x312   : > { %1937 = vmatprep.subr.bf16.mxu0 %v2871_v3  ;;  %1978 = vmatprep.subr.bf16.mxu1 %v2873_v60  ;;  %v3220_v45 = vld [vmem:[%s4377_s5 + $0x180] sm:$0xff]  }
 0x315   : > { %1938 = vmatpush1.bf16.msra.mxu0 %v2870_v57  ;;  %1979 = vmatpush1.bf16.msra.mxu1 %v2872_v4  ;;  %v3221_v57 = vld [vmem:[%s4377_s5 + $0x148] sm:$0xff]  }
 0x316   : > { %2968 = vmatprep.subr.bf16.mxu0 %v3185_v47  ;;  %2990 = vmatprep.subr.bf16.mxu1 %v3186_v58  ;;  %v3222_v4 = vld [vmem:[%s4377_s5 + $0x1c8] sm:$0xff]  }
 0x317   : > { %v3223_v47 = vld [vmem:[%s4377_s5 + $0x108] sm:$0xff]  }
 0x318   : > { %1956 = vmatmul.mubr.bf16.vlgmr.msra.gmra.mrb[4].mxu0 %v4027_v56  ;;  %1997 = vmatmul.mubr.bf16.vlgmr.msra.gmra.mrb[4].mxu1 %v4027_v56  ;;  %v3195_v56 = vld [vmem:[%s4377_s5 + $0x10] sm:$0xff]   ;;  %v3224_v58 = vld [vmem:[%s4377_s5 + $0x188] sm:$0xff]  }
 0x319   : > { %2969 = vmatpush3.bf16.msra.mxu0 %v3187_v26  ;;  %2991 = vmatpush3.bf16.msra.mxu1 %v3188_v59  ;;  %v3225_v26 = vld [vmem:[%s4377_s5 + $0x150] sm:$0xff]  }
 0x31a   : > { %2970 = vmatprep.subr.bf16.mxu0 %v3189_v54  ;;  %2992 = vmatprep.subr.bf16.mxu1 %v3190_v61  ;;  %v3226_v59 = vld [vmem:[%s4377_s5 + $0x1d0] sm:$0xff]  }
 0x31b   : > { %v3227_v54 = vld [vmem:[%s4377_s5 + $0x110] sm:$0xff]  }
 0x31c   : > { %v3228_v61 = vld [vmem:[%s4377_s5 + $0x190] sm:$0xff]  }
 0x31d   : > { %2971 = vmatpush3.bf16.msra.mxu0 %v3191_v55  ;;  %2993 = vmatpush3.bf16.msra.mxu1 %v3192_v52  ;;  %v3229_v55 = vld [vmem:[%s4377_s5 + $0x158] sm:$0xff]  }
 0x31e   : > { %2972 = vmatprep.subr.bf16.mxu0 %v3193_v42  ;;  %2994 = vmatprep.subr.bf16.mxu1 %v3194_v5  ;;  %v3230_v52 = vld [vmem:[%s4377_s5 + $0x1d8] sm:$0xff]  }
 0x31f   : > { %v3231_v42 = vld [vmem:[%s4377_s5 + $0x118] sm:$0xff]  }
 0x320   : > { %v3232_v5 = vld [vmem:[%s4377_s5 + $0x198] sm:$0xff]  }
 0x321   : > { %2973 = vmatpush3.bf16.msra.mxu0 %v3195_v56  ;;  %2995 = vmatpush3.bf16.msra.mxu1 %v3196_v6  ;;  %v3233_v56 = vld [vmem:[%s4377_s5 + $0x160] sm:$0xff]  }
 0x322   : > { %2974 = vmatprep.subr.bf16.mxu0 %v3197_v7  ;;  %2996 = vmatprep.subr.bf16.mxu1 %v3198_v8  ;;  %v3234_v6 = vld [vmem:[%s4377_s5 + $0x1e0] sm:$0xff]  }
 0x323   : > { %v3235_v7 = vld [vmem:[%s4377_s5 + $0x120] sm:$0xff]  }
 0x324   : > { %v3236_v8 = vld [vmem:[%s4377_s5 + $0x1a0] sm:$0xff]  }
 0x325   : > { %2975 = vmatpush3.bf16.msra.mxu0 %v3199_v27  ;;  %2997 = vmatpush3.bf16.msra.mxu1 %v3200_v36  ;;  %v3237_v27 = vld [vmem:[%s4377_s5 + $0x168] sm:$0xff]  }
 0x326   : > { %2976 = vmatprep.subr.bf16.mxu0 %v3201_v9  ;;  %2998 = vmatprep.subr.bf16.mxu1 %v3202_v10  ;;  %v3238_v36 = vld [vmem:[%s4377_s5 + $0x1e8] sm:$0xff]  }
 0x327   : > { %v3239_v9 = vld [vmem:[%s4377_s5 + $0x128] sm:$0xff]  }
 0x328   : > { %v3240_v10 = vld [vmem:[%s4377_s5 + $0x1a8] sm:$0xff]  }
 0x329   : > { %2977 = vmatpush3.bf16.msra.mxu0 %v3203_v11  ;;  %2999 = vmatpush3.bf16.msra.mxu1 %v3204_v2  ;;  %v3241_v11 = vld [vmem:[%s4377_s5 + $0x170] sm:$0xff]  }
 0x32a   : > { %2978 = vmatprep.subr.bf16.mxu0 %v3205_v12  ;;  %3000 = vmatprep.subr.bf16.mxu1 %v3206_v17  ;;  %v3242_v2 = vld [vmem:[%s4377_s5 + $0x1f0] sm:$0xff]   ;;  %v1257_v12 = vsub.s32 4, %v3673_v62  ;;  %v1265_v17 = vsub.s32 6, %v3673_v62 }
 0x32d   : > { %2979 = vmatpush3.bf16.msra.mxu0 %v3207_v13  ;;  %3001 = vmatpush3.bf16.msra.mxu1 %v3208_v37  ;;  %v1261_v13 = vsub.s32 5, %v3673_v62  ;;  %v1269_v37 = vsub.s32 7, %v3673_v62  ;;  %v3245_v62 = vld [vmem:[%s4377_s5 + $0x178] sm:$0xff]  }
 0x32e   : > { %2980 = vmatprep.subr.bf16.mxu0 %v3209_v38  ;;  %3002 = vmatprep.subr.bf16.mxu1 %v3210_v39  ;;  %v3243_v38 = vld [vmem:[%s4377_s5 + $0x130] sm:$0xff]  }
 0x32f   : > { %v3244_v39 = vld [vmem:[%s4377_s5 + $0x1b0] sm:$0xff]  }
 0x331   : > { %2981 = vmatpush3.bf16.msra.mxu0 %v3211_v41  ;;  %3003 = vmatpush3.bf16.msra.mxu1 %v3212_v48  ;;  %v1258_v41 = vrot.slane %v4220_v20, %v1257_v12  ;;  %v1266_v48 = vrot.slane %v4220_v20, %v1265_v17 }
 0x332   : > { %2982 = vmatprep.subr.bf16.mxu0 %v3213_v43  ;;  %3004 = vmatprep.subr.bf16.mxu1 %v3214_v14  ;;  %v3246_v43 = vld [vmem:[%s4377_s5 + $0x1f8] sm:$0xff]   ;;  %v1262_v14 = vrot.slane %v4220_v20, %v1261_v13 }
 0x335   : > { %2983 = vmatpush3.bf16.msra.mxu0 %v3215_v15  ;;  %3005 = vmatpush3.bf16.msra.mxu1 %v3216_v40  ;;  %v1270_v15 = vrot.slane %v4220_v20, %v1269_v37 }
 0x336   : > { %3012 = vmatprep.subr.bf16.mxu0 %v3217_v16  ;;  %3034 = vmatprep.subr.bf16.mxu1 %v3218_v18  ;;  %v3247_v18 = vld [vmem:[%s4377_s5 + $0x138] sm:$0xff]  }
 0x3cb   : > { %v1875_v32 = vpop.f32.mrb[0].mxu0  ;;  %v1916_v33 = vpop.f32.mrb[0].mxu1 }
 0x3cc   : > { %v1876_v28 = vadd.f32 %v1875_v32, %v1242_v31  ;;  %v1917_v34 = vadd.f32 %v1916_v33, %v1250_v23  ;;  %v1877_v50 = vpop.f32.mrb[1].mxu0  ;;  %v1918_v49 = vpop.f32.mrb[1].mxu1 }
 0x3cd   : > { %v1878_v51 = vadd.f32 %v1877_v50, %v1246_v24  ;;  %v1919_v44 = vadd.f32 %v1918_v49, %v1254_v35  ;;  %v1879_v53 = vpop.f32.mrb[2].mxu0  ;;  %v1920_v63 = vpop.f32.mrb[2].mxu1 }
 0x3ce   : > { %v1880_v29 = vpop.f32.mrb[3].mxu0  ;;  %v1921_v46 = vpop.f32.mrb[3].mxu1  ;;  %v2005_v3 = vpack.c.bf16 %v1876_v28, %v1876_v28  ;;  %v2007_v60 = vpack.c.bf16 %v1917_v34, %v1917_v34  ;;  %v2874_v53 = vld [vmem:[%s4378_s6] ss:$0 sm:$0xff] }
 0x3cf   : > { %v2006_v0 = vpack.c.bf16 %v1878_v51, %v1878_v51  ;;  %v2008_v25 = vpack.c.bf16 %v1919_v44, %v1919_v44 }
 0x3d1   : > { %2564 = vmatprep.mubr.bf16.mxu0 %v2006_v0  ;;  %2604 = vmatprep.mubr.bf16.mxu1 %v2008_v25 }
 0x3d2   : > { %2565 = vmatmul.mubr.bf16.vlgmr.msra.gmra.mrb[8].mxu0 %v2005_v3  ;;  %2605 = vmatmul.mubr.bf16.vlgmr.msra.gmra.mrb[8].mxu1 %v2007_v60 }
 0x3d3   : > { %3013 = vmatpush3.bf16.msra.mxu0 %v3219_v1  ;;  %3035 = vmatpush3.bf16.msra.mxu1 %v3220_v45 }
 0x3d4   : > { %3014 = vmatprep.subr.bf16.mxu0 %v3221_v57  ;;  %3036 = vmatprep.subr.bf16.mxu1 %v3222_v4 }
 0x3d7   : > { %3015 = vmatpush3.bf16.msra.mxu0 %v3223_v47  ;;  %3037 = vmatpush3.bf16.msra.mxu1 %v3224_v58 }
 0x3d8   : > { %3016 = vmatprep.subr.bf16.mxu0 %v3225_v26  ;;  %3038 = vmatprep.subr.bf16.mxu1 %v3226_v59 }
 0x3db   : > { %3017 = vmatpush3.bf16.msra.mxu0 %v3227_v54  ;;  %3039 = vmatpush3.bf16.msra.mxu1 %v3228_v61 }
 0x3dc   : > { %3018 = vmatprep.subr.bf16.mxu0 %v3229_v55  ;;  %3040 = vmatprep.subr.bf16.mxu1 %v3230_v52 }
 0x3df   : > { %3019 = vmatpush3.bf16.msra.mxu0 %v3231_v42  ;;  %3041 = vmatpush3.bf16.msra.mxu1 %v3232_v5 }
 0x3e0   : > { %3020 = vmatprep.subr.bf16.mxu0 %v3233_v56  ;;  %3042 = vmatprep.subr.bf16.mxu1 %v3234_v6 }
 0x3e3   : > { %3021 = vmatpush3.bf16.msra.mxu0 %v3235_v7  ;;  %3043 = vmatpush3.bf16.msra.mxu1 %v3236_v8 }
 0x3e4   : > { %3022 = vmatprep.subr.bf16.mxu0 %v3237_v27  ;;  %3044 = vmatprep.subr.bf16.mxu1 %v3238_v36 }
 0x3e7   : > { %3023 = vmatpush3.bf16.msra.mxu0 %v3239_v9  ;;  %3045 = vmatpush3.bf16.msra.mxu1 %v3240_v10 }
 0x3e8   : > { %3024 = vmatprep.subr.bf16.mxu0 %v3241_v11  ;;  %3046 = vmatprep.subr.bf16.mxu1 %v3242_v2 }
 0x3eb   : > { %v1957_v40 = vpop.f32.mrb[4].mxu0  ;;  %v1998_v16 = vpop.f32.mrb[4].mxu1  ;;  %3025 = vmatpush3.bf16.msra.mxu0 %v3243_v38  ;;  %3047 = vmatpush3.bf16.msra.mxu1 %v3244_v39 }
 0x3ec   : > { %v1958_v30 = vadd.f32 %v1957_v40, %v1258_v41  ;;  %v1999_v21 = vadd.f32 %v1998_v16, %v1266_v48  ;;  %v1959_v22 = vpop.f32.mrb[5].mxu0  ;;  %v2000_v31 = vpop.f32.mrb[5].mxu1  ;;  %3026 = vmatprep.subr.bf16.mxu0 %v3245_v62  ;;  %3048 = vmatprep.subr.bf16.mxu1 %v3246_v43 }
 0x3ed   : > { %v1960_v23 = vadd.f32 %v1959_v22, %v1262_v14  ;;  %v2001_v20 = vadd.f32 %v2000_v31, %v1270_v15  ;;  %v1961_v24 = vpop.f32.mrb[6].mxu0  ;;  %v2002_v35 = vpop.f32.mrb[6].mxu1 }
 0x3ee   : > { %v1962_v32 = vpop.f32.mrb[7].mxu0  ;;  %v2003_v33 = vpop.f32.mrb[7].mxu1  ;;  %v2009_v50 = vpack.c.bf16 %v1958_v30, %v1958_v30  ;;  %v2011_v49 = vpack.c.bf16 %v1999_v21, %v1999_v21 }
 0x3ef   : > { %v2010_v28 = vpack.c.bf16 %v1960_v23, %v1960_v23  ;;  %v2012_v34 = vpack.c.bf16 %v2001_v20, %v2001_v20  ;;  %3027 = vmatpush3.bf16.msra.mxu0 %v3247_v18  ;;  %3049 = vmatpush3.bf16.msra.mxu1 %v3248_v19 }
 0x3f1   : > { %2644 = vmatprep.mubr.bf16.mxu0 %v2010_v28  ;;  %2684 = vmatprep.mubr.bf16.mxu1 %v2012_v34 }
 0x3f2   : > { %2645 = vmatmul.mubr.bf16.vlgmr.msra.gmra.mrb[12].mxu0 %v2009_v50  ;;  %2685 = vmatmul.mubr.bf16.vlgmr.msra.gmra.mrb[12].mxu1 %v2011_v49 }
 0x4a5   : > { %v2984_v51 = vpop.f32.mrb[8].mxu0  ;;  %v3006_v44 = vpop.f32.mrb[8].mxu1 }
 0x4a6   : > { %v2985_v63 = vpop.f32.mrb[9].mxu0  ;;  %v3007_v29 = vpop.f32.mrb[9].mxu1 }
 0x4a7   : > { %v2986_v46 = vadd.f32 %v2985_v63, %v2984_v51  ;;  %v3008_v0 = vadd.f32 %v3007_v29, %v3006_v44  ;;  %v2987_v25 = vpop.f32.mrb[10].mxu0  ;;  %v3009_v1 = vpop.f32.mrb[10].mxu1 }
 0x4a8   : > { %v2988_v45 = vpop.f32.mrb[11].mxu0  ;;  %v3010_v3 = vpop.f32.mrb[11].mxu1 }
 0x4a9   : > { %v2567_v60 = vadd.f32 %v2986_v46, %v2874_v53 }
 0x4ab   : > { %v2607_v57 = vadd.f32 %v3008_v0, %v2567_v60 }
 0x4c5   : > { %v3028_v4 = vpop.f32.mrb[12].mxu0  ;;  %v3050_v47 = vpop.f32.mrb[12].mxu1 }
 0x4c6   : > { %v3029_v58 = vpop.f32.mrb[13].mxu0  ;;  %v3051_v26 = vpop.f32.mrb[13].mxu1 }
 0x4c7   : > { %v3030_v59 = vadd.f32 %v3029_v58, %v3028_v4  ;;  %v3052_v54 = vadd.f32 %v3051_v26, %v3050_v47  ;;  %v3031_v61 = vpop.f32.mrb[14].mxu0  ;;  %v3053_v55 = vpop.f32.mrb[14].mxu1 }
 0x4c8   : > { %v3032_v52 = vpop.f32.mrb[15].mxu0  ;;  %v3054_v42 = vpop.f32.mrb[15].mxu1 }
 0x4c9   : > { %v2647_v5 = vadd.f32 %v3030_v59, %v2607_v57 }
 0x4cb   : > { %v2687_v56 = vadd.f32 %v3052_v54, %v2647_v5 }
 0x4cd   : > { %v2692_v6 = vsub.f32 0.0, %v2687_v56 }
 0x4cf   : > { %v2693_v7 = vmul.f32 1.442695, %v2692_v6 }
 0x4d1   : > { %3249 = vpow2.f32 %v2693_v7 }
 0x4db   : > { %v3250_v8 = vpop.eup %3249 }
 0x4dc   : > { %v2695_v27 = vadd.f32 1.0, %v3250_v8 }
 0x4de   : > { %3251 = vrcp.f32 %v2695_v27 }
 0x4e8   : > { %v3252_v36 = vpop.eup %3251 }
 0x4e9   : > { %2698 = vst [vmem:[#allocation4] sm:$0x3] %v3252_v36 }
 0x4ea PF: > { %p4331_p12 = scmp.eq.s32.totalorder %s2775_s29, 1  ;;  %s3336_s23 = smov [#allocation4]  }
 0x4eb   : > { %s2708_s24 = sshll.u32 %s3336_s23, 4  ;;  %s2709_s24 = int_to_ptr.vmem [resolvable:$true] %s2708_s24 }
 0x4ec   : > { %s3253_s8 = scalar_lea.vmem %s2709_s24, 32  ;;  %p3260_p2 = scmp.lt.s32.totalorder %s2709_s24, %s2709_s24 }
 0x4ed   : > { %p3254_p13 = scmp.ne.s32.totalorder %s2709_s24, %s3253_s8  ;;  %p3261_p3 = scmp.lt.s32.totalorder %s3253_s8, %s3253_s8 }
 0x4ef   : > { %p3255_p0 = pnand %p3254_p13, %p4331_p12  ;;  %p3262_p4 = por %p3261_p3, %p3260_p2 }
 0x4f1   : > { %p3256_p1 = pneg %p3255_p0 }
 0x4f3   : > { %p3263_p5 = pnand %p3262_p4, %p3256_p1 }
 0x4f5   : > { %3266 = shalt.err (!%p3263_p5)
}
 0x4f6   : > { %s3267_s29 = scalar_lea.hbm %s4379_s7, 32 }
 0x4f7   : > { %p3268_p6 = scmp.ne.s32.totalorder %s4379_s7, %s3267_s29  ;;  %p3273_p9 = scmp.lt.u32.totalorder %s3267_s29, %s4379_s7 }
 0x4f9   : > { %p3269_p7 = pnand %p3268_p6, %p4331_p12 }
 0x4fb   : > { %p3270_p8 = pneg %p3269_p7 }
 0x4fd   : > { %p3275_p10 = pnand %p3273_p9, %p3270_p8 }
 0x4ff   : > { %3278 = shalt.err (!%p3275_p10)
}
 0x500   : > { %3124 = dma.vmem_to_hbm [thread:$0]  (%p4331_p12), %s2709_s24, 32, %s4379_s7, [#allocation5]  }
 0x501   : > { %3304 = dma.done.wait (%p4331_p12), [#allocation5], 32  }
 0x502   : > { %3306 = vsyncadd (%p4331_p12), [#allocation5], 4294967264 }
 0x503 PF: > { %s18_s28 = sadd.s32 1, %s3325_s28   ;;  %s4390_s24 = smov %s3313_s25 }
 0x504   : > { %p15_p11 = scmp.ge.s32.totalorder %s18_s28, 4   ;;  %s4391_s25 = smov %s3413_s10 }
 0x505   : > { %s4392_s26 = smov %s3321_s27  ;;  %s4393_s27 = smov %s4395_s30 }
 0x506   :  { %17 = sbr.rel (!%p15_p11) target bundleno = 3 (0x3), region = 150 }
 0x50d   :  { %2721 = vsyncpa [#allocation5], 1 }
 0x50e   :  { %2723 = vsyncpa [#allocation5 + $0x1], 1 }

</bundles_post_ra>
